<compile_context>
chip_gen: v7x
topology: tpu7x:2x2x1
jax: 0.10.0
libtpu: 0.0.40
codegen_flags: <defaults>
</compile_context>

<pallas_src>
import numpy as np
import jax
import jax.numpy as jnp
from jax import lax
from jax.experimental import pallas as pl

EPS = 1e-5
BF16 = jnp.bfloat16


# --------------------- wrapper-side constant preprocessing -----------------
# (tiny, parameter-only XLA work; activations never leave the kernel)

def _conv_out(n, k, s):
    return (n - k) // s + 1


def _pad_to(n, m):
    return ((n + m - 1) // m) * m


def _toeplitz_tap(w_tap, w_in, conv_ow, stride):
    """w_tap:(CO,CI,KW) -> dense (CI*w_in, CO*conv_ow) Toeplitz for one H-tap:
    T[ci*w_in + w, co*conv_ow + o] = w_tap[co, ci, w - stride*o] (if in range)."""
    CO, CI, KW = w_tap.shape
    j = jnp.arange(w_in)[:, None] - stride * jnp.arange(conv_ow)[None, :]
    valid = (j >= 0) & (j < KW)
    tap = w_tap[:, :, jnp.clip(j, 0, KW - 1)]            # (CO, CI, w_in, conv_ow)
    T = jnp.where(valid[None, None], tap, 0.0)
    return T.transpose(1, 2, 0, 3).reshape(CI * w_in, CO * conv_ow)


def _fold_pool_scale(T, CO, conv_ow, pw, scale, half_cols):
    """Fold per-channel BN scale and the even/odd W max-pool selection into the
    Toeplitz.  T:(K, CO*conv_ow) -> (K, 2*half_cols).  Columns [0:half_cols) are
    the 'even' pool candidates (conv position 2*cp), [half_cols:) the 'odd' ones
    (2*cp+1); each half is zero-padded from CO*pw to half_cols (lane alignment)."""
    K = T.shape[0]
    Tr = T.reshape(K, CO, conv_ow) * scale[None, :, None]
    Te = Tr[:, :, 0:2 * pw:2].reshape(K, CO * pw)
    To = Tr[:, :, 1:2 * pw:2].reshape(K, CO * pw)
    pad = ((0, 0), (0, half_cols - CO * pw))
    return jnp.concatenate([jnp.pad(Te, pad), jnp.pad(To, pad)], axis=1)


def _bn_affine(p):
    """BN(running stats) + conv bias -> per-channel (scale, shift)."""
    scale = p["gamma"] / jnp.sqrt(p["var"] + EPS)
    shift = p["beta"] - scale * p["mean"] + scale * p["b"]
    return scale, shift


def _shift_lanes(shift, pw, half_cols):
    """Per-channel shift -> lane-expanded (1, half_cols), zero in padded lanes."""
    v = jnp.repeat(shift, pw)
    return jnp.pad(v, (0, half_cols - v.shape[0]))[None, :]


# ------------------------------ fused forward ------------------------------

def conv_block_forward(x, params):
    N, CI, H, W = x.shape
    w1 = params["input"]["w"]       # (C1, CI, 3, 8)
    w2 = params["h1"]["w"]          # (C2, C1, 1, 8)
    w3 = params["h2"]["w"]          # (C2, C2, 1, 8)
    C1, C2 = w1.shape[0], w2.shape[0]
    assert w1.shape[2] == 3 and w2.shape[2] == 1 and w3.shape[2] == 1

    # static geometry (mirrors ConvBlock.calculate_size)
    OH1, OW1 = _conv_out(H, 3, 2), _conv_out(W, w1.shape[3], 2)
    PH1, PW1 = _conv_out(OH1, 2, 2), _conv_out(OW1, 2, 2)
    OW2, PW2 = _conv_out(PW1, w2.shape[3], 2), _conv_out(_conv_out(PW1, w2.shape[3], 2), 2, 2)
    OW3, PW3 = _conv_out(PW2, w3.shape[3], 2), _conv_out(_conv_out(PW2, w3.shape[3], 2), 2, 2)
    assert OH1 >= 2 and PH1 == 1, "kernel specialization assumes a single pooled H row"
    F = params["fc1"]["w"].shape[0]
    fc_in = C2 * PW3
    assert params["fc1"]["w"].shape[1] == fc_in

    # lane-aligned pooled widths per stage
    P1 = _pad_to(C1 * PW1, 128)
    P2 = _pad_to(C2 * PW2, 128)
    P3 = _pad_to(C2 * PW3, 128)
    K1 = 3 * CI * W

    # ---- folded bf16 constants ----
    sc1, sh1v = _bn_affine(params["input"])
    sc2, sh2v = _bn_affine(params["h1"])
    sc3, sh3v = _bn_affine(params["h2"])

    T1f = jnp.concatenate([_toeplitz_tap(w1[:, :, i, :], W, OW1, 2) for i in range(3)], axis=0)
    T1 = _fold_pool_scale(T1f, C1, OW1, PW1, sc1, P1).astype(BF16)          # (K1, 2*P1)

    T2f = jnp.pad(_toeplitz_tap(w2[:, :, 0, :], PW1, OW2, 2), ((0, P1 - C1 * PW1), (0, 0)))
    T2 = _fold_pool_scale(T2f, C2, OW2, PW2, sc2, P2).astype(BF16)          # (P1, 2*P2)

    T3f = jnp.pad(_toeplitz_tap(w3[:, :, 0, :], PW2, OW3, 2), ((0, P2 - C2 * PW2), (0, 0)))
    T3 = _fold_pool_scale(T3f, C2, OW3, PW3, sc3, P3).astype(BF16)          # (P2, 2*P3)

    sh1 = _shift_lanes(sh1v, PW1, P1)
    sh2 = _shift_lanes(sh2v, PW2, P2)
    sh3 = _shift_lanes(sh3v, PW3, P3)

    fw1 = jnp.pad(params["fc1"]["w"].T, ((0, P3 - fc_in), (0, 0))).astype(BF16)
    fw2 = params["fc2"]["w"].T.astype(BF16)
    fw3 = params["fc3"]["w"].T.astype(BF16)
    fb1 = params["fc1"]["b"][None, :]
    fb2 = params["fc2"]["b"][None, :]
    fb3 = params["fc3"]["b"][None, :]

    # stage-1 LHS: the two surviving H windows (rows 0-2, 2-4) stacked along rows;
    # row layout per window is [tap, ci, w] to match T1's row layout.
    win = jnp.stack([x[:, :, 2 * oh:2 * oh + 3, :] for oh in range(2)], axis=0)  # (2,N,CI,3,W)
    X1 = win.transpose(0, 1, 3, 2, 4).reshape(2 * N, K1).astype(BF16)

    def kernel(x1_ref, t1_ref, s1_ref, t2_ref, s2_ref, t3_ref, s3_ref,
               fw1_ref, fb1_ref, fw2_ref, fb2_ref, fw3_ref, fb3_ref, o_ref):
        def dot(a, b):
            return jnp.dot(a, b, preferred_element_type=jnp.float32)

        # stage "input": Conv2d(CI->C1, k=(3,8), s=2) + BN + ReLU + MaxPool(2,2)/2
        z = dot(x1_ref[...], t1_ref[...])                    # (2N, 2*P1)
        zw = jnp.maximum(z[:, :P1], z[:, P1:])               # W-pool (even/odd cols)
        zh = jnp.maximum(zw[:N], zw[N:])                     # H-pool (conv rows 0/1)
        a1 = jnp.maximum(zh + s1_ref[...], 0.0)              # BN shift + ReLU

        # stage "h1": Conv2d(C1->C2, k=(1,8), s=2) + BN + ReLU + MaxPool(1,2)/2
        z = dot(a1.astype(BF16), t2_ref[...])                # (N, 2*P2)
        a2 = jnp.maximum(jnp.maximum(z[:, :P2], z[:, P2:]) + s2_ref[...], 0.0)

        # stage "h2": Conv2d(C2->C2, k=(1,8), s=2) + BN + ReLU + MaxPool(1,2)/2
        z = dot(a2.astype(BF16), t3_ref[...])                # (N, 2*P3)
        a3 = jnp.maximum(jnp.maximum(z[:, :P3], z[:, P3:]) + s3_ref[...], 0.0)

        # flatten (already lane-ordered c*PW3+pw) + fc1/fc2/fc3 (Linear + ReLU)
        f = jnp.maximum(dot(a3.astype(BF16), fw1_ref[...]) + fb1_ref[...], 0.0)
        f = jnp.maximum(dot(f.astype(BF16), fw2_ref[...]) + fb2_ref[...], 0.0)
        f = jnp.maximum(dot(f.astype(BF16), fw3_ref[...]) + fb3_ref[...], 0.0)
        o_ref[...] = f

    operands = (X1, T1, sh1, T2, sh2, T3, sh3, fw1, fb1, fw2, fb2, fw3, fb3)

    dots = [(2 * N, K1, 2 * P1), (N, P1, 2 * P2), (N, P2, 2 * P3),
            (N, P3, F), (N, F, F), (N, F, F)]
    cost = pl.CostEstimate(
        flops=int(sum(2 * m * k * n for m, k, n in dots)),
        transcendentals=0,
        bytes_accessed=int(sum(op.size * op.dtype.itemsize for op in operands) + 4 * N * F))

    return pl.pallas_call(
        kernel,
        out_shape=jax.ShapeDtypeStruct((N, F), jnp.float32),
        cost_estimate=cost,
    )(*operands)


# --------------------------- pure-JAX reference ----------------------------

STAGES = (
    dict(name="input", conv_stride=(2, 2), pool_k=(2, 2), pool_s=(2, 2)),
    dict(name="h1",    conv_stride=(2, 2), pool_k=(1, 2), pool_s=(2, 2)),
    dict(name="h2",    conv_stride=(2, 2), pool_k=(1, 2), pool_s=(2, 2)),
)


def ref_forward(x, params):
    out = x
    for st in STAGES:
        p = params[st["name"]]
        y = lax.conv_general_dilated(
            out, p["w"], window_strides=st["conv_stride"], padding="VALID",
            dimension_numbers=("NCHW", "OIHW", "NCHW"))
        y = y + p["b"][None, :, None, None]
        sc = p["gamma"] / jnp.sqrt(p["var"] + EPS)
        y = sc[None, :, None, None] * (y - p["mean"][None, :, None, None]) \
            + p["beta"][None, :, None, None]
        y = jnp.maximum(y, 0.0)
        kh, kw = st["pool_k"]
        sh, sw = st["pool_s"]
        out = lax.reduce_window(y, -jnp.inf, lax.max,
                                (1, 1, kh, kw), (1, 1, sh, sw), "VALID")
    out = out.reshape(out.shape[0], -1)
    for name in ("fc1", "fc2", "fc3"):
        out = jnp.maximum(out @ params[name]["w"].T + params[name]["b"], 0.0)
    return out


# ------------------------------ parameters ---------------------------------

def init_params(key, input_channels, units, fc_in):
    ks = iter(jax.random.split(key, 40))

    def conv_stage(co, ci, kh, kw):
        return dict(
            w=0.1 * jax.random.normal(next(ks), (co, ci, kh, kw), jnp.float32),
            b=0.05 * jax.random.normal(next(ks), (co,), jnp.float32),
            gamma=jax.random.uniform(next(ks), (co,), jnp.float32, 0.8, 1.2),
            beta=0.05 * jax.random.normal(next(ks), (co,), jnp.float32),
            mean=0.05 * jax.random.normal(next(ks), (co,), jnp.float32),
            var=jax.random.uniform(next(ks), (co,), jnp.float32, 0.8, 1.2),
        )

    def linear(n_out, n_in):
        limit = float(np.sqrt(6.0 / (n_in + n_out)))  # xavier_uniform, like init_weights
        return dict(
            w=jax.random.uniform(next(ks), (n_out, n_in), jnp.float32, -limit, limit),
            b=0.05 * jax.random.normal(next(ks), (n_out,), jnp.float32),
        )

    return {
        "input": conv_stage(units[0], input_channels, 3, 8),
        "h1":    conv_stage(units[1], units[0], 1, 8),
        "h2":    conv_stage(units[1], units[1], 1, 8),
        "fc1":   linear(units[2], fc_in),
        "fc2":   linear(units[2], units[2]),
        "fc3":   linear(units[2], units[2]),
        # fc4 omitted: unused in forward()
    }


if __name__ == "__main__":
    batch, input_channels = 2, 2
    units = [4, 8, 32]
    H, W = 8, 256                               # input_size = (batch, 2, 8, 256)

    # replicate ConvBlock.calculate_size (exo_size == [])
    h, w = H, W
    h, w = _conv_out(h, 3, 2), _conv_out(w, 8, 2)   # input conv
    h, w = _conv_out(h, 2, 2), _conv_out(w, 2, 2)   # input pool
    h, w = _conv_out(h, 1, 2), _conv_out(w, 8, 2)   # h1 conv
    h, w = _conv_out(h, 1, 2), _conv_out(w, 2, 2)   # h1 pool
    h, w = _conv_out(h, 1, 2), _conv_out(w, 8, 2)   # h2 conv
    h, w = _conv_out(h, 1, 2), _conv_out(w, 2, 2)   # h2 pool
    fc_input_size = units[1] * h * w

    key = jax.random.PRNGKey(0)
    k_x, k_p = jax.random.split(key)
    x = jax.random.normal(k_x, (batch, input_channels, H, W), jnp.float32)
    params = init_params(k_p, input_channels, units, fc_input_size)

    out = jax.block_until_ready(jax.jit(conv_block_forward)(x, params))
    ref = jax.block_until_ready(ref_forward(x, params))

    assert out.shape == (batch, units[2]), out.shape
    err = float(np.max(np.abs(np.asarray(out) - np.asarray(ref))))
    # bf16 matmul operands (f32 accumulation) vs a pure-f32 reference: tolerance
    # reflects bf16 input quantization through 6 chained contractions.
    assert np.allclose(np.asarray(out), np.asarray(ref), rtol=5e-2, atol=5e-2), err

    print("KERNEL_OK")
</pallas_src>

<mosaic_0001>
module attributes {stable_mosaic.version = 11 : i64} {
  func.func @kernel(%arg0: memref<4x1536xbf16, #tpu.memory_space<vmem>>, %arg1: memref<1536x512xbf16, #tpu.memory_space<vmem>>, %arg2: memref<1x256xf32, #tpu.memory_space<vmem>>, %arg3: memref<256x256xbf16, #tpu.memory_space<vmem>>, %arg4: memref<1x128xf32, #tpu.memory_space<vmem>>, %arg5: memref<128x256xbf16, #tpu.memory_space<vmem>>, %arg6: memref<1x128xf32, #tpu.memory_space<vmem>>, %arg7: memref<128x32xbf16, #tpu.memory_space<vmem>>, %arg8: memref<1x32xf32, #tpu.memory_space<vmem>>, %arg9: memref<32x32xbf16, #tpu.memory_space<vmem>>, %arg10: memref<1x32xf32, #tpu.memory_space<vmem>>, %arg11: memref<32x32xbf16, #tpu.memory_space<vmem>>, %arg12: memref<1x32xf32, #tpu.memory_space<vmem>>, %arg13: memref<2x32xf32, #tpu.memory_space<vmem>>) attributes {dimension_semantics = [], scalar_prefetch = 0 : i64, scratch_operands = 0 : i64, tpu.core_type = #tpu.core_type<tc>} {
    %c0 = arith.constant 0 : index
    %c0_0 = arith.constant 0 : index
    %0 = vector.load %arg0[%c0, %c0_0] : memref<4x1536xbf16, #tpu.memory_space<vmem>>, vector<4x1536xbf16>
    %c0_1 = arith.constant 0 : index
    %c0_2 = arith.constant 0 : index
    %1 = vector.load %arg1[%c0_1, %c0_2] : memref<1536x512xbf16, #tpu.memory_space<vmem>>, vector<1536x512xbf16>
    %cst = arith.constant dense<0.000000e+00> : vector<4x512xf32>
    %2 = tpu.matmul %0, %1, %cst {dimension_numbers = #tpu.dot_dimension_numbers<[1], [0], [0], [1], [0, 0, 1, 1], [], []>} : vector<4x1536xbf16>, vector<1536x512xbf16>, vector<4x512xf32> -> vector<4x512xf32>
    %3 = vector.extract_strided_slice %2 {offsets = [0, 0], sizes = [4, 256], strides = [1, 1]} : vector<4x512xf32> to vector<4x256xf32>
    %4 = vector.extract_strided_slice %2 {offsets = [0, 256], sizes = [4, 256], strides = [1, 1]} : vector<4x512xf32> to vector<4x256xf32>
    %5 = arith.maximumf %3, %4 : vector<4x256xf32>
    %6 = vector.extract_strided_slice %5 {offsets = [0, 0], sizes = [2, 256], strides = [1, 1]} : vector<4x256xf32> to vector<2x256xf32>
    %7 = vector.extract_strided_slice %5 {offsets = [2, 0], sizes = [2, 256], strides = [1, 1]} : vector<4x256xf32> to vector<2x256xf32>
    %8 = arith.maximumf %6, %7 : vector<2x256xf32>
    %c0_3 = arith.constant 0 : index
    %c0_4 = arith.constant 0 : index
    %9 = vector.load %arg2[%c0_3, %c0_4] : memref<1x256xf32, #tpu.memory_space<vmem>>, vector<1x256xf32>
    %10 = vector.broadcast %9 : vector<1x256xf32> to vector<2x256xf32>
    %11 = arith.addf %8, %10 : vector<2x256xf32>
    %cst_5 = arith.constant 0.000000e+00 : f32
    %12 = vector.broadcast %cst_5 : f32 to vector<2x256xf32>
    %13 = arith.maximumf %11, %12 : vector<2x256xf32>
    %14 = arith.truncf %13 : vector<2x256xf32> to vector<2x256xbf16>
    %c0_6 = arith.constant 0 : index
    %c0_7 = arith.constant 0 : index
    %15 = vector.load %arg3[%c0_6, %c0_7] : memref<256x256xbf16, #tpu.memory_space<vmem>>, vector<256x256xbf16>
    %cst_8 = arith.constant dense<0.000000e+00> : vector<2x256xf32>
    %16 = tpu.matmul %14, %15, %cst_8 {dimension_numbers = #tpu.dot_dimension_numbers<[1], [0], [0], [1], [0, 0, 1, 1], [], []>} : vector<2x256xbf16>, vector<256x256xbf16>, vector<2x256xf32> -> vector<2x256xf32>
    %17 = vector.extract_strided_slice %16 {offsets = [0, 0], sizes = [2, 128], strides = [1, 1]} : vector<2x256xf32> to vector<2x128xf32>
    %18 = vector.extract_strided_slice %16 {offsets = [0, 128], sizes = [2, 128], strides = [1, 1]} : vector<2x256xf32> to vector<2x128xf32>
    %19 = arith.maximumf %17, %18 : vector<2x128xf32>
    %c0_9 = arith.constant 0 : index
    %c0_10 = arith.constant 0 : index
    %20 = vector.load %arg4[%c0_9, %c0_10] : memref<1x128xf32, #tpu.memory_space<vmem>>, vector<1x128xf32>
    %21 = vector.broadcast %20 : vector<1x128xf32> to vector<2x128xf32>
    %22 = arith.addf %19, %21 : vector<2x128xf32>
    %cst_11 = arith.constant 0.000000e+00 : f32
    %23 = vector.broadcast %cst_11 : f32 to vector<2x128xf32>
    %24 = arith.maximumf %22, %23 : vector<2x128xf32>
    %25 = arith.truncf %24 : vector<2x128xf32> to vector<2x128xbf16>
    %c0_12 = arith.constant 0 : index
    %c0_13 = arith.constant 0 : index
    %26 = vector.load %arg5[%c0_12, %c0_13] : memref<128x256xbf16, #tpu.memory_space<vmem>>, vector<128x256xbf16>
    %cst_14 = arith.constant dense<0.000000e+00> : vector<2x256xf32>
    %27 = tpu.matmul %25, %26, %cst_14 {dimension_numbers = #tpu.dot_dimension_numbers<[1], [0], [0], [1], [0, 0, 1, 1], [], []>} : vector<2x128xbf16>, vector<128x256xbf16>, vector<2x256xf32> -> vector<2x256xf32>
    %28 = vector.extract_strided_slice %27 {offsets = [0, 0], sizes = [2, 128], strides = [1, 1]} : vector<2x256xf32> to vector<2x128xf32>
    %29 = vector.extract_strided_slice %27 {offsets = [0, 128], sizes = [2, 128], strides = [1, 1]} : vector<2x256xf32> to vector<2x128xf32>
    %30 = arith.maximumf %28, %29 : vector<2x128xf32>
    %c0_15 = arith.constant 0 : index
    %c0_16 = arith.constant 0 : index
    %31 = vector.load %arg6[%c0_15, %c0_16] : memref<1x128xf32, #tpu.memory_space<vmem>>, vector<1x128xf32>
    %32 = vector.broadcast %31 : vector<1x128xf32> to vector<2x128xf32>
    %33 = arith.addf %30, %32 : vector<2x128xf32>
    %cst_17 = arith.constant 0.000000e+00 : f32
    %34 = vector.broadcast %cst_17 : f32 to vector<2x128xf32>
    %35 = arith.maximumf %33, %34 : vector<2x128xf32>
    %36 = arith.truncf %35 : vector<2x128xf32> to vector<2x128xbf16>
    %c0_18 = arith.constant 0 : index
    %c0_19 = arith.constant 0 : index
    %37 = vector.load %arg7[%c0_18, %c0_19] : memref<128x32xbf16, #tpu.memory_space<vmem>>, vector<128x32xbf16>
    %cst_20 = arith.constant dense<0.000000e+00> : vector<2x32xf32>
    %38 = tpu.matmul %36, %37, %cst_20 {dimension_numbers = #tpu.dot_dimension_numbers<[1], [0], [0], [1], [0, 0, 1, 1], [], []>} : vector<2x128xbf16>, vector<128x32xbf16>, vector<2x32xf32> -> vector<2x32xf32>
    %c0_21 = arith.constant 0 : index
    %c0_22 = arith.constant 0 : index
    %39 = vector.load %arg8[%c0_21, %c0_22] : memref<1x32xf32, #tpu.memory_space<vmem>>, vector<1x32xf32>
    %40 = vector.broadcast %39 : vector<1x32xf32> to vector<2x32xf32>
    %41 = arith.addf %38, %40 : vector<2x32xf32>
    %cst_23 = arith.constant 0.000000e+00 : f32
    %42 = vector.broadcast %cst_23 : f32 to vector<2x32xf32>
    %43 = arith.maximumf %41, %42 : vector<2x32xf32>
    %44 = arith.truncf %43 : vector<2x32xf32> to vector<2x32xbf16>
    %c0_24 = arith.constant 0 : index
    %c0_25 = arith.constant 0 : index
    %45 = vector.load %arg9[%c0_24, %c0_25] : memref<32x32xbf16, #tpu.memory_space<vmem>>, vector<32x32xbf16>
    %cst_26 = arith.constant dense<0.000000e+00> : vector<2x32xf32>
    %46 = tpu.matmul %44, %45, %cst_26 {dimension_numbers = #tpu.dot_dimension_numbers<[1], [0], [0], [1], [0, 0, 1, 1], [], []>} : vector<2x32xbf16>, vector<32x32xbf16>, vector<2x32xf32> -> vector<2x32xf32>
    %c0_27 = arith.constant 0 : index
    %c0_28 = arith.constant 0 : index
    %47 = vector.load %arg10[%c0_27, %c0_28] : memref<1x32xf32, #tpu.memory_space<vmem>>, vector<1x32xf32>
    %48 = vector.broadcast %47 : vector<1x32xf32> to vector<2x32xf32>
    %49 = arith.addf %46, %48 : vector<2x32xf32>
    %cst_29 = arith.constant 0.000000e+00 : f32
    %50 = vector.broadcast %cst_29 : f32 to vector<2x32xf32>
    %51 = arith.maximumf %49, %50 : vector<2x32xf32>
    %52 = arith.truncf %51 : vector<2x32xf32> to vector<2x32xbf16>
    %c0_30 = arith.constant 0 : index
    %c0_31 = arith.constant 0 : index
    %53 = vector.load %arg11[%c0_30, %c0_31] : memref<32x32xbf16, #tpu.memory_space<vmem>>, vector<32x32xbf16>
    %cst_32 = arith.constant dense<0.000000e+00> : vector<2x32xf32>
    %54 = tpu.matmul %52, %53, %cst_32 {dimension_numbers = #tpu.dot_dimension_numbers<[1], [0], [0], [1], [0, 0, 1, 1], [], []>} : vector<2x32xbf16>, vector<32x32xbf16>, vector<2x32xf32> -> vector<2x32xf32>
    %c0_33 = arith.constant 0 : index
    %c0_34 = arith.constant 0 : index
    %55 = vector.load %arg12[%c0_33, %c0_34] : memref<1x32xf32, #tpu.memory_space<vmem>>, vector<1x32xf32>
    %56 = vector.broadcast %55 : vector<1x32xf32> to vector<2x32xf32>
    %57 = arith.addf %54, %56 : vector<2x32xf32>
    %cst_35 = arith.constant 0.000000e+00 : f32
    %58 = vector.broadcast %cst_35 : f32 to vector<2x32xf32>
    %59 = arith.maximumf %57, %58 : vector<2x32xf32>
    %c0_36 = arith.constant 0 : index
    %c0_37 = arith.constant 0 : index
    %60 = vector.load %arg13[%c0_36, %c0_37] : memref<2x32xf32, #tpu.memory_space<vmem>>, vector<2x32xf32>
    tpu.vector_store %arg13[%c0_36, %c0_37], %59 {strides = array<i32>} : memref<2x32xf32, #tpu.memory_space<vmem>>, vector<2x32xf32>,
    return
  }
}

</mosaic_0001>

<bundles_post_ra>
// kernel: conv_block_forward.1
= control target key start
LH: loop header
LB: loop body
LE: loop exit
PB: predicated region body
PF: predicated region fallthrough
CT: control target
= control target key end

     0   :  { %v4830_v36 = vmov 1983009808   ;;  %v440_v38 = vlaneseq  ;;  %s6332_s0 = inlined_call_operand.vmem [shape: bf16[4,1536], index: 0, kind: input, shape index: {}]   ;;  %s6333_s1 = inlined_call_operand.vmem [shape: bf16[1536,512], index: 1, kind: input, shape index: {}]   ;;  %s6334_s2 = inlined_call_operand.vmem [shape: f32[1,256], index: 2, kind: input, shape index: {}]   ;;  %s6335_s3 = inlined_call_operand.vmem [shape: bf16[256,256], index: 3, kind: input, shape index: {}]   ;;  %s6336_s4 = inlined_call_operand.vmem [shape: f32[1,128], index: 4, kind: input, shape index: {}]   ;;  %s6337_s5 = inlined_call_operand.vmem [shape: bf16[128,256], index: 5, kind: input, shape index: {}]   ;;  %s6338_s6 = inlined_call_operand.vmem [shape: f32[1,128], index: 6, kind: input, shape index: {}]   ;;  %s6339_s7 = inlined_call_operand.vmem [shape: bf16[128,32], index: 7, kind: input, shape index: {}]   ;;  %s6340_s8 = inlined_call_operand.vmem [shape: f32[1,32], index: 8, kind: input, shape index: {}]   ;;  %s6341_s9 = inlined_call_operand.vmem [shape: bf16[32,32], index: 9, kind: input, shape index: {}]   ;;  %s6342_s10 = inlined_call_operand.vmem [shape: f32[1,32], index: 10, kind: input, shape index: {}]   ;;  %s6343_s11 = inlined_call_operand.vmem [shape: bf16[32,32], index: 11, kind: input, shape index: {}]   ;;  %s6344_s12 = inlined_call_operand.vmem [shape: f32[1,32], index: 12, kind: input, shape index: {}]   ;;  %s6345_s13 = inlined_call_operand.hbm [shape: f32[2,32], index: 13, kind: output, shape index: {}]  }
   0x1   :  { %v4143_v0 = vld [vmem:[%s6333_s1 + $0x4] ss:$16 sps:$4 sm:$0xff]   ;;  %v4145_v1 = vld [vmem:[%s6333_s1 + $0xc] ss:$16 sps:$4 sm:$0xff]   ;;  %v4147_v2 = vld [vmem:[%s6333_s1] ss:$16 sps:$4 sm:$0xff]   ;;  %v438_v37 = vunpack.c.l.s4 %v4830_v36 }
   0x2   :  { %2419 = vmatprep.subr.bf16.mxu0 %v4143_v0  ;;  %v4148_v3 = vld [vmem:[%s6333_s1 + $0x8] ss:$16 sps:$4 sm:$0xff]   ;;  %2665 = vmatprep.subr.bf16.mxu1 %v4145_v1  ;;  %v4149_v4 = vld [vmem:[%s6333_s1 + $0x24] ss:$16 sps:$4 sm:$0xff]   ;;  %v4151_v5 = vld [vmem:[%s6333_s1 + $0x2c] ss:$16 sps:$4 sm:$0xff]  }
   0x3   :  { %2420 = vmatpush1.bf16.msra.mxu0 %v4147_v2  ;;  %2666 = vmatpush1.bf16.msra.mxu1 %v4148_v3  ;;  %v4153_v6 = vld [vmem:[%s6333_s1 + $0x20] ss:$16 sps:$4 sm:$0xff]   ;;  %v4154_v7 = vld [vmem:[%s6333_s1 + $0x28] ss:$16 sps:$4 sm:$0xff]   ;;  %v4155_v8 = vld [vmem:[%s6333_s1 + $0x44] ss:$16 sps:$4 sm:$0xff]   ;;  %v439_v42 = vunpack.c.0.s8 %v438_v37 }
   0x4   :  { %2421 = vmatprep.subr.bf16.mxu0 %v4149_v4  ;;  %2667 = vmatprep.subr.bf16.mxu1 %v4151_v5  ;;  %v4157_v9 = vld [vmem:[%s6333_s1 + $0x4c] ss:$16 sps:$4 sm:$0xff]   ;;  %v4159_v10 = vld [vmem:[%s6333_s1 + $0x40] ss:$16 sps:$4 sm:$0xff]   ;;  %v4160_v11 = vld [vmem:[%s6333_s1 + $0x48] ss:$16 sps:$4 sm:$0xff]  }
   0x5   :  { %v4161_v12 = vld [vmem:[%s6333_s1 + $0x64] ss:$16 sps:$4 sm:$0xff]   ;;  %v4163_v13 = vld [vmem:[%s6333_s1 + $0x6c] ss:$16 sps:$4 sm:$0xff]   ;;  %v4165_v14 = vld [vmem:[%s6333_s1 + $0x60] ss:$16 sps:$4 sm:$0xff]  }
   0x6   :  { %v4166_v15 = vld [vmem:[%s6333_s1 + $0x68] ss:$16 sps:$4 sm:$0xff]   ;;  %v4167_v16 = vld [vmem:[%s6333_s1 + $0x84] ss:$16 sps:$4 sm:$0xff]   ;;  %v4169_v17 = vld [vmem:[%s6333_s1 + $0x8c] ss:$16 sps:$4 sm:$0xff]  }
   0x7   :  { %2422 = vmatpush1.bf16.msra.mxu0 %v4153_v6  ;;  %2668 = vmatpush1.bf16.msra.mxu1 %v4154_v7  ;;  %v4171_v18 = vld [vmem:[%s6333_s1 + $0x80] ss:$16 sps:$4 sm:$0xff]   ;;  %v4172_v19 = vld [vmem:[%s6333_s1 + $0x88] ss:$16 sps:$4 sm:$0xff]   ;;  %v4173_v20 = vld [vmem:[%s6333_s1 + $0xa4] ss:$16 sps:$4 sm:$0xff]  }
   0x8   :  { %2423 = vmatprep.subr.bf16.mxu0 %v4155_v8  ;;  %2669 = vmatprep.subr.bf16.mxu1 %v4157_v9  ;;  %v4175_v21 = vld [vmem:[%s6333_s1 + $0xac] ss:$16 sps:$4 sm:$0xff]   ;;  %v4177_v22 = vld [vmem:[%s6333_s1 + $0xa0] ss:$16 sps:$4 sm:$0xff]   ;;  %v4178_v23 = vld [vmem:[%s6333_s1 + $0xa8] ss:$16 sps:$4 sm:$0xff]  }
   0x9   :  { %v4179_v24 = vld [vmem:[%s6333_s1 + $0xc4] ss:$16 sps:$4 sm:$0xff]   ;;  %v4181_v25 = vld [vmem:[%s6333_s1 + $0xcc] ss:$16 sps:$4 sm:$0xff]   ;;  %v4183_v26 = vld [vmem:[%s6333_s1 + $0xc0] ss:$16 sps:$4 sm:$0xff]  }
   0xa   :  { %v4184_v27 = vld [vmem:[%s6333_s1 + $0xc8] ss:$16 sps:$4 sm:$0xff]   ;;  %v4185_v28 = vld [vmem:[%s6333_s1 + $0xe4] ss:$16 sps:$4 sm:$0xff]   ;;  %v4187_v29 = vld [vmem:[%s6333_s1 + $0xec] ss:$16 sps:$4 sm:$0xff]  }
   0xb   :  { %2424 = vmatpush1.bf16.msra.mxu0 %v4159_v10  ;;  %2670 = vmatpush1.bf16.msra.mxu1 %v4160_v11  ;;  %v4189_v30 = vld [vmem:[%s6333_s1 + $0xe0] ss:$16 sps:$4 sm:$0xff]   ;;  %v4190_v31 = vld [vmem:[%s6333_s1 + $0xe8] ss:$16 sps:$4 sm:$0xff]   ;;  %v4191_v32 = vld [vmem:[%s6333_s1 + $0x104] ss:$16 sps:$4 sm:$0xff]  }
   0xc   :  { %2425 = vmatprep.subr.bf16.mxu0 %v4161_v12  ;;  %2671 = vmatprep.subr.bf16.mxu1 %v4163_v13  ;;  %v4193_v33 = vld [vmem:[%s6333_s1 + $0x10c] ss:$16 sps:$4 sm:$0xff]   ;;  %v4195_v34 = vld [vmem:[%s6333_s1 + $0x100] ss:$16 sps:$4 sm:$0xff]   ;;  %v4196_v35 = vld [vmem:[%s6333_s1 + $0x108] ss:$16 sps:$4 sm:$0xff]  }
   0xd   :  { %v4197_v39 = vld [vmem:[%s6333_s1 + $0x124] ss:$16 sps:$4 sm:$0xff]   ;;  %v4199_v40 = vld [vmem:[%s6333_s1 + $0x12c] ss:$16 sps:$4 sm:$0xff]   ;;  %v4201_v41 = vld [vmem:[%s6333_s1 + $0x120] ss:$16 sps:$4 sm:$0xff]  }
   0xe   :  { %v5022_v43 = vshrl.u32 %v440_v38, 7  ;;  %v4202_v44 = vld [vmem:[%s6333_s1 + $0x128] ss:$16 sps:$4 sm:$0xff]   ;;  %v4203_v45 = vld [vmem:[%s6333_s1 + $0x144] ss:$16 sps:$4 sm:$0xff]  }
   0xf   :  { %2426 = vmatpush1.bf16.msra.mxu0 %v4165_v14  ;;  %2672 = vmatpush1.bf16.msra.mxu1 %v4166_v15  ;;  %v4205_v46 = vld [vmem:[%s6333_s1 + $0x14c] ss:$16 sps:$4 sm:$0xff]   ;;  %v4207_v47 = vld [vmem:[%s6333_s1 + $0x140] ss:$16 sps:$4 sm:$0xff]   ;;  %v4208_v48 = vld [vmem:[%s6333_s1 + $0x148] ss:$16 sps:$4 sm:$0xff]  }
  0x10   :  { %2427 = vmatprep.subr.bf16.mxu0 %v4167_v16  ;;  %2673 = vmatprep.subr.bf16.mxu1 %v4169_v17  ;;  %v5040_v49 = vsub.s32 %v439_v42, %v5022_v43  ;;  %v4209_v50 = vld [vmem:[%s6333_s1 + $0x164] ss:$16 sps:$4 sm:$0xff]   ;;  %v4211_v51 = vld [vmem:[%s6333_s1 + $0x16c] ss:$16 sps:$4 sm:$0xff]   ;;  %v4213_v53 = vld [vmem:[%s6333_s1 + $0x160] ss:$16 sps:$4 sm:$0xff]  }
  0x11   :  { %v46_v52 = vld [vmem:[%s6332_s0] sm:$0xff]  ;;  %v4214_v55 = vld [vmem:[%s6333_s1 + $0x168] ss:$16 sps:$4 sm:$0xff]   ;;  %v4217_v57 = vld [vmem:[%s6333_s1 + $0x18c] ss:$16 sps:$4 sm:$0xff]  }
  0x12   :  { %v443_v54 = vrot.slane %v46_v52, %v5040_v49  ;;  %v4215_v56 = vld [vmem:[%s6333_s1 + $0x184] ss:$16 sps:$4 sm:$0xff]   ;;  %v4219_v59 = vld [vmem:[%s6333_s1 + $0x180] ss:$16 sps:$4 sm:$0xff]   ;;  %v4220_v60 = vld [vmem:[%s6333_s1 + $0x188] ss:$16 sps:$4 sm:$0xff]   ;;  %v436_v7 = vcombine.high %v46_v52, %v46_v52 }
  0x13   :  { %2428 = vmatpush1.bf16.msra.mxu0 %v4171_v18  ;;  %2674 = vmatpush1.bf16.msra.mxu1 %v4172_v19  ;;  %v4221_v61 = vld [vmem:[%s6333_s1 + $0x1a4] ss:$16 sps:$4 sm:$0xff]   ;;  %v4223_v62 = vld [vmem:[%s6333_s1 + $0x1ac] ss:$16 sps:$4 sm:$0xff]   ;;  %v4225_v63 = vld [vmem:[%s6333_s1 + $0x1a0] ss:$16 sps:$4 sm:$0xff]  }
  0x14   :  { %2429 = vmatprep.subr.bf16.mxu0 %v4173_v20  ;;  %2675 = vmatprep.subr.bf16.mxu1 %v4175_v21  ;;  %v451_v58 = vcombine.high %v443_v54, %v443_v54  ;;  %v4226_v0 = vld [vmem:[%s6333_s1 + $0x1a8] ss:$16 sps:$4 sm:$0xff]   ;;  %v4227_v1 = vld [vmem:[%s6333_s1 + $0x1c4] ss:$16 sps:$4 sm:$0xff]   ;;  %v4229_v2 = vld [vmem:[%s6333_s1 + $0x1cc] ss:$16 sps:$4 sm:$0xff]   ;;  %v5113_v12 = vrot.slane %v436_v7, %v5040_v49 }
  0x15   :  { %v4231_v3 = vld [vmem:[%s6333_s1 + $0x1c0] ss:$16 sps:$4 sm:$0xff]   ;;  %v4232_v4 = vld [vmem:[%s6333_s1 + $0x1c8] ss:$16 sps:$4 sm:$0xff]   ;;  %v4233_v5 = vld [vmem:[%s6333_s1 + $0x1e4] ss:$16 sps:$4 sm:$0xff]  }
  0x16   :  { %2451 = vmatprep.mubr.bf16.mxu0 %v451_v58  ;;  %2697 = vmatprep.mubr.bf16.mxu1 %v451_v58  ;;  %v4235_v6 = vld [vmem:[%s6333_s1 + $0x1ec] ss:$16 sps:$4 sm:$0xff]   ;;  %v4237_v8 = vld [vmem:[%s6333_s1 + $0x1e0] ss:$16 sps:$4 sm:$0xff]   ;;  %v4238_v9 = vld [vmem:[%s6333_s1 + $0x1e8] ss:$16 sps:$4 sm:$0xff]   ;;  %v452_v17 = vcombine.high %v5113_v12, %v5113_v12 }
  0x17   :  { %2430 = vmatpush1.bf16.msra.mxu0 %v4177_v22  ;;  %2676 = vmatpush1.bf16.msra.mxu1 %v4178_v23  ;;  %v4242_v10 = vld [vmem:[%s6333_s1 + $0x204] ss:$16 sps:$4 sm:$0xff]   ;;  %v4245_v11 = vld [vmem:[%s6333_s1 + $0x20c] ss:$16 sps:$4 sm:$0xff]   ;;  %v4240_v13 = vld [vmem:[%s6333_s1 + $0x200] ss:$16 sps:$4 sm:$0xff]  }
  0x18   :  { %2431 = vmatprep.subr.bf16.mxu0 %v4179_v24  ;;  %2677 = vmatprep.subr.bf16.mxu1 %v4181_v25  ;;  %v4243_v14 = vld [vmem:[%s6333_s1 + $0x208] ss:$16 sps:$4 sm:$0xff]   ;;  %v4248_v15 = vld [vmem:[%s6333_s1 + $0x224] ss:$16 sps:$4 sm:$0xff]   ;;  %v4251_v16 = vld [vmem:[%s6333_s1 + $0x22c] ss:$16 sps:$4 sm:$0xff]  }
  0x19   :  { %v4246_v18 = vld [vmem:[%s6333_s1 + $0x220] ss:$16 sps:$4 sm:$0xff]   ;;  %v4249_v19 = vld [vmem:[%s6333_s1 + $0x228] ss:$16 sps:$4 sm:$0xff]   ;;  %v4254_v20 = vld [vmem:[%s6333_s1 + $0x244] ss:$16 sps:$4 sm:$0xff]  }
  0x1a   :  { %v4257_v21 = vld [vmem:[%s6333_s1 + $0x24c] ss:$16 sps:$4 sm:$0xff]   ;;  %v4252_v22 = vld [vmem:[%s6333_s1 + $0x240] ss:$16 sps:$4 sm:$0xff]   ;;  %v4255_v23 = vld [vmem:[%s6333_s1 + $0x248] ss:$16 sps:$4 sm:$0xff]  }
  0x1b   :  { %2432 = vmatpush1.bf16.msra.mxu0 %v4183_v26  ;;  %2678 = vmatpush1.bf16.msra.mxu1 %v4184_v27  ;;  %v4260_v24 = vld [vmem:[%s6333_s1 + $0x264] ss:$16 sps:$4 sm:$0xff]   ;;  %v4263_v25 = vld [vmem:[%s6333_s1 + $0x26c] ss:$16 sps:$4 sm:$0xff]   ;;  %v4258_v26 = vld [vmem:[%s6333_s1 + $0x260] ss:$16 sps:$4 sm:$0xff]  }
  0x1c   :  { %2433 = vmatprep.subr.bf16.mxu0 %v4185_v28  ;;  %2679 = vmatprep.subr.bf16.mxu1 %v4187_v29  ;;  %v4261_v27 = vld [vmem:[%s6333_s1 + $0x268] ss:$16 sps:$4 sm:$0xff]   ;;  %v4266_v28 = vld [vmem:[%s6333_s1 + $0x284] ss:$16 sps:$4 sm:$0xff]   ;;  %v4269_v29 = vld [vmem:[%s6333_s1 + $0x28c] ss:$16 sps:$4 sm:$0xff]  }
  0x1d   :  { %v4278_v36 = vld [vmem:[%s6333_s1 + $0x2c4] ss:$16 sps:$4 sm:$0xff]   ;;  %v4281_v37 = vld [vmem:[%s6333_s1 + $0x2cc] ss:$16 sps:$4 sm:$0xff]   ;;  %v4276_v38 = vld [vmem:[%s6333_s1 + $0x2c0] ss:$16 sps:$4 sm:$0xff]  }
  0x1e   :  { %v4282_v42 = vld [vmem:[%s6333_s1 + $0x2e0] ss:$16 sps:$4 sm:$0xff]   ;;  %v4308_v58 = vld [vmem:[%s6333_s1 + $0x364] ss:$16 sps:$4 sm:$0xff]   ;;  %v4329_v7 = vld [vmem:[%s6333_s1 + $0x3cc] ss:$16 sps:$4 sm:$0xff]  }
  0x1f   :  { %2434 = vmatpush1.bf16.msra.mxu0 %v4189_v30  ;;  %2680 = vmatpush1.bf16.msra.mxu1 %v4190_v31  ;;  %v4264_v30 = vld [vmem:[%s6333_s1 + $0x280] ss:$16 sps:$4 sm:$0xff]   ;;  %v4267_v31 = vld [vmem:[%s6333_s1 + $0x288] ss:$16 sps:$4 sm:$0xff]  }
  0x20   :  { %2435 = vmatprep.subr.bf16.mxu0 %v4191_v32  ;;  %2681 = vmatprep.subr.bf16.mxu1 %v4193_v33  ;;  %v4272_v32 = vld [vmem:[%s6333_s1 + $0x2a4] ss:$16 sps:$4 sm:$0xff]   ;;  %v4275_v33 = vld [vmem:[%s6333_s1 + $0x2ac] ss:$16 sps:$4 sm:$0xff]   ;;  %v4294_v52 = vld [vmem:[%s6333_s1 + $0x320] ss:$16 sps:$4 sm:$0xff]  }
  0x23   :  { %2436 = vmatpush1.bf16.msra.mxu0 %v4195_v34  ;;  %2682 = vmatpush1.bf16.msra.mxu1 %v4196_v35  ;;  %v4270_v34 = vld [vmem:[%s6333_s1 + $0x2a0] ss:$16 sps:$4 sm:$0xff]   ;;  %v4273_v35 = vld [vmem:[%s6333_s1 + $0x2a8] ss:$16 sps:$4 sm:$0xff]  }
  0x24   :  { %2437 = vmatprep.subr.bf16.mxu0 %v4197_v39  ;;  %2683 = vmatprep.subr.bf16.mxu1 %v4199_v40  ;;  %v4279_v39 = vld [vmem:[%s6333_s1 + $0x2c8] ss:$16 sps:$4 sm:$0xff]   ;;  %v4284_v40 = vld [vmem:[%s6333_s1 + $0x2e4] ss:$16 sps:$4 sm:$0xff]  }
  0x27   :  { %2438 = vmatpush1.bf16.msra.mxu0 %v4201_v41  ;;  %2684 = vmatpush1.bf16.msra.mxu1 %v4202_v44  ;;  %v4287_v41 = vld [vmem:[%s6333_s1 + $0x2ec] ss:$16 sps:$4 sm:$0xff]   ;;  %v4285_v44 = vld [vmem:[%s6333_s1 + $0x2e8] ss:$16 sps:$4 sm:$0xff]  }
  0x28   :  { %2439 = vmatprep.subr.bf16.mxu0 %v4203_v45  ;;  %2685 = vmatprep.subr.bf16.mxu1 %v4205_v46  ;;  %v4290_v45 = vld [vmem:[%s6333_s1 + $0x304] ss:$16 sps:$4 sm:$0xff]   ;;  %v4293_v46 = vld [vmem:[%s6333_s1 + $0x30c] ss:$16 sps:$4 sm:$0xff]  }
  0x2b   :  { %2440 = vmatpush1.bf16.msra.mxu0 %v4207_v47  ;;  %2686 = vmatpush1.bf16.msra.mxu1 %v4208_v48  ;;  %v4288_v47 = vld [vmem:[%s6333_s1 + $0x300] ss:$16 sps:$4 sm:$0xff]   ;;  %v4291_v48 = vld [vmem:[%s6333_s1 + $0x308] ss:$16 sps:$4 sm:$0xff]  }
  0x2c   :  { %2441 = vmatprep.subr.bf16.mxu0 %v4209_v50  ;;  %2687 = vmatprep.subr.bf16.mxu1 %v4211_v51  ;;  %v4296_v50 = vld [vmem:[%s6333_s1 + $0x324] ss:$16 sps:$4 sm:$0xff]   ;;  %v4299_v51 = vld [vmem:[%s6333_s1 + $0x32c] ss:$16 sps:$4 sm:$0xff]  }
  0x2f   :  { %2442 = vmatpush1.bf16.msra.mxu0 %v4213_v53  ;;  %2688 = vmatpush1.bf16.msra.mxu1 %v4214_v55  ;;  %v4297_v53 = vld [vmem:[%s6333_s1 + $0x328] ss:$16 sps:$4 sm:$0xff]   ;;  %v4305_v55 = vld [vmem:[%s6333_s1 + $0x34c] ss:$16 sps:$4 sm:$0xff]  }
  0x30   :  { %2443 = vmatprep.subr.bf16.mxu0 %v4215_v56  ;;  %2689 = vmatprep.subr.bf16.mxu1 %v4217_v57  ;;  %v4300_v56 = vld [vmem:[%s6333_s1 + $0x340] ss:$16 sps:$4 sm:$0xff]   ;;  %v4303_v57 = vld [vmem:[%s6333_s1 + $0x348] ss:$16 sps:$4 sm:$0xff]  }
  0x33   :  { %2444 = vmatpush1.bf16.msra.mxu0 %v4219_v59  ;;  %2690 = vmatpush1.bf16.msra.mxu1 %v4220_v60  ;;  %v4311_v59 = vld [vmem:[%s6333_s1 + $0x36c] ss:$16 sps:$4 sm:$0xff]   ;;  %v4306_v60 = vld [vmem:[%s6333_s1 + $0x360] ss:$16 sps:$4 sm:$0xff]  }
  0x34   :  { %2445 = vmatprep.subr.bf16.mxu0 %v4221_v61  ;;  %2691 = vmatprep.subr.bf16.mxu1 %v4223_v62  ;;  %v4309_v61 = vld [vmem:[%s6333_s1 + $0x368] ss:$16 sps:$4 sm:$0xff]   ;;  %v4314_v62 = vld [vmem:[%s6333_s1 + $0x384] ss:$16 sps:$4 sm:$0xff]  }
  0x37   :  { %2446 = vmatpush1.bf16.msra.mxu0 %v4225_v63  ;;  %2692 = vmatpush1.bf16.msra.mxu1 %v4226_v0  ;;  %v4317_v63 = vld [vmem:[%s6333_s1 + $0x38c] ss:$16 sps:$4 sm:$0xff]   ;;  %v4312_v0 = vld [vmem:[%s6333_s1 + $0x380] ss:$16 sps:$4 sm:$0xff]  }
  0x38   :  { %2447 = vmatprep.subr.bf16.mxu0 %v4227_v1  ;;  %2693 = vmatprep.subr.bf16.mxu1 %v4229_v2  ;;  %v4315_v1 = vld [vmem:[%s6333_s1 + $0x388] ss:$16 sps:$4 sm:$0xff]   ;;  %v4320_v2 = vld [vmem:[%s6333_s1 + $0x3a4] ss:$16 sps:$4 sm:$0xff]  }
  0x3b   :  { %2448 = vmatpush1.bf16.msra.mxu0 %v4231_v3  ;;  %2694 = vmatpush1.bf16.msra.mxu1 %v4232_v4  ;;  %v4323_v3 = vld [vmem:[%s6333_s1 + $0x3ac] ss:$16 sps:$4 sm:$0xff]   ;;  %v4318_v4 = vld [vmem:[%s6333_s1 + $0x3a0] ss:$16 sps:$4 sm:$0xff]  }
  0x3c   :  { %2449 = vmatprep.subr.bf16.mxu0 %v4233_v5  ;;  %2695 = vmatprep.subr.bf16.mxu1 %v4235_v6  ;;  %v4321_v5 = vld [vmem:[%s6333_s1 + $0x3a8] ss:$16 sps:$4 sm:$0xff]   ;;  %v4326_v6 = vld [vmem:[%s6333_s1 + $0x3c4] ss:$16 sps:$4 sm:$0xff]  }
  0x3f   :  { %2450 = vmatpush1.bf16.msra.mxu0 %v4237_v8  ;;  %2696 = vmatpush1.bf16.msra.mxu1 %v4238_v9  ;;  %v4324_v8 = vld [vmem:[%s6333_s1 + $0x3c0] ss:$16 sps:$4 sm:$0xff]   ;;  %v4327_v9 = vld [vmem:[%s6333_s1 + $0x3c8] ss:$16 sps:$4 sm:$0xff]  }
  0x40   :  { %2460 = vmatprep.subr.bf16.mxu0 %v4242_v10  ;;  %2706 = vmatprep.subr.bf16.mxu1 %v4245_v11  ;;  %v4332_v10 = vld [vmem:[%s6333_s1 + $0x3e4] ss:$16 sps:$4 sm:$0xff]   ;;  %v4335_v11 = vld [vmem:[%s6333_s1 + $0x3ec] ss:$16 sps:$4 sm:$0xff]  }
  0x42   :  { %2452 = vmatmul.mubr.bf16.vlgmr.msra.gmra.mrb[0].mxu0 %v443_v54  ;;  %2698 = vmatmul.mubr.bf16.vlgmr.msra.gmra.mrb[0].mxu1 %v443_v54  ;;  %v4302_v54 = vld [vmem:[%s6333_s1 + $0x344] ss:$16 sps:$4 sm:$0xff]  }
  0x43   :  { %2461 = vmatpush1.bf16.msra.mxu0 %v4240_v13  ;;  %2707 = vmatpush1.bf16.msra.mxu1 %v4243_v14  ;;  %v4330_v13 = vld [vmem:[%s6333_s1 + $0x3e0] ss:$16 sps:$4 sm:$0xff]   ;;  %v4333_v14 = vld [vmem:[%s6333_s1 + $0x3e8] ss:$16 sps:$4 sm:$0xff]  }
  0x44   :  { %2462 = vmatprep.subr.bf16.mxu0 %v4248_v15  ;;  %2708 = vmatprep.subr.bf16.mxu1 %v4251_v16  ;;  %v4338_v15 = vld [vmem:[%s6333_s1 + $0x404] ss:$16 sps:$4 sm:$0xff]   ;;  %v4341_v16 = vld [vmem:[%s6333_s1 + $0x40c] ss:$16 sps:$4 sm:$0xff]  }
  0x45   :  { %2492 = vmatprep.mubr.bf16.mxu0 %v452_v17  ;;  %2738 = vmatprep.mubr.bf16.mxu1 %v452_v17  ;;  %v4336_v17 = vld [vmem:[%s6333_s1 + $0x400] ss:$16 sps:$4 sm:$0xff]  }
  0x47   :  { %2463 = vmatpush1.bf16.msra.mxu0 %v4246_v18  ;;  %2709 = vmatpush1.bf16.msra.mxu1 %v4249_v19  ;;  %v4339_v18 = vld [vmem:[%s6333_s1 + $0x408] ss:$16 sps:$4 sm:$0xff]  }
  0x48   :  { %2464 = vmatprep.subr.bf16.mxu0 %v4254_v20  ;;  %2710 = vmatprep.subr.bf16.mxu1 %v4257_v21  ;;  %v5318_v19 = vld [vmem:[%s6332_s0 + $0x8] sm:$0xff]  ;;  %v4344_v20 = vld [vmem:[%s6333_s1 + $0x424] ss:$16 sps:$4 sm:$0xff]  }
  0x49   :  { %v4347_v21 = vld [vmem:[%s6333_s1 + $0x42c] ss:$16 sps:$4 sm:$0xff]  }
  0x4b   :  { %2465 = vmatpush1.bf16.msra.mxu0 %v4252_v22  ;;  %2711 = vmatpush1.bf16.msra.mxu1 %v4255_v23  ;;  %v5328_v22 = vrot.slane %v5318_v19, %v5040_v49 }
  0x4c   :  { %2466 = vmatprep.subr.bf16.mxu0 %v4260_v24  ;;  %2712 = vmatprep.subr.bf16.mxu1 %v4263_v25  ;;  %v4342_v24 = vld [vmem:[%s6333_s1 + $0x420] ss:$16 sps:$4 sm:$0xff]   ;;  %v4345_v25 = vld [vmem:[%s6333_s1 + $0x428] ss:$16 sps:$4 sm:$0xff]  }
  0x4d   :  { %v468_v23 = vcombine.high %v5328_v22, %v5328_v22 }
  0x4f   :  { %2467 = vmatpush1.bf16.msra.mxu0 %v4258_v26  ;;  %2713 = vmatpush1.bf16.msra.mxu1 %v4261_v27  ;;  %v4350_v26 = vld [vmem:[%s6333_s1 + $0x444] ss:$16 sps:$4 sm:$0xff]   ;;  %v4348_v27 = vld [vmem:[%s6333_s1 + $0x440] ss:$16 sps:$4 sm:$0xff]  }
  0x50   :  { %2468 = vmatprep.subr.bf16.mxu0 %v4266_v28  ;;  %2714 = vmatprep.subr.bf16.mxu1 %v4269_v29  ;;  %v4351_v28 = vld [vmem:[%s6333_s1 + $0x448] ss:$16 sps:$4 sm:$0xff]   ;;  %v4356_v29 = vld [vmem:[%s6333_s1 + $0x464] ss:$16 sps:$4 sm:$0xff]  }
  0x53   :  { %2469 = vmatpush1.bf16.msra.mxu0 %v4264_v30  ;;  %2715 = vmatpush1.bf16.msra.mxu1 %v4267_v31  ;;  %v4359_v30 = vld [vmem:[%s6333_s1 + $0x46c] ss:$16 sps:$4 sm:$0xff]   ;;  %v4354_v31 = vld [vmem:[%s6333_s1 + $0x460] ss:$16 sps:$4 sm:$0xff]  }
  0x54   :  { %2470 = vmatprep.subr.bf16.mxu0 %v4272_v32  ;;  %2716 = vmatprep.subr.bf16.mxu1 %v4275_v33  ;;  %v4357_v32 = vld [vmem:[%s6333_s1 + $0x468] ss:$16 sps:$4 sm:$0xff]   ;;  %v4362_v33 = vld [vmem:[%s6333_s1 + $0x484] ss:$16 sps:$4 sm:$0xff]  }
  0x57   :  { %2471 = vmatpush1.bf16.msra.mxu0 %v4270_v34  ;;  %2717 = vmatpush1.bf16.msra.mxu1 %v4273_v35  ;;  %v4365_v34 = vld [vmem:[%s6333_s1 + $0x48c] ss:$16 sps:$4 sm:$0xff]   ;;  %v4360_v35 = vld [vmem:[%s6333_s1 + $0x480] ss:$16 sps:$4 sm:$0xff]  }
  0x58   :  { %2472 = vmatprep.subr.bf16.mxu0 %v4278_v36  ;;  %2718 = vmatprep.subr.bf16.mxu1 %v4281_v37  ;;  %v4363_v36 = vld [vmem:[%s6333_s1 + $0x488] ss:$16 sps:$4 sm:$0xff]   ;;  %v4368_v37 = vld [vmem:[%s6333_s1 + $0x4a4] ss:$16 sps:$4 sm:$0xff]  }
  0x5b   :  { %2473 = vmatpush1.bf16.msra.mxu0 %v4276_v38  ;;  %2719 = vmatpush1.bf16.msra.mxu1 %v4279_v39  ;;  %v4371_v38 = vld [vmem:[%s6333_s1 + $0x4ac] ss:$16 sps:$4 sm:$0xff]   ;;  %v4366_v39 = vld [vmem:[%s6333_s1 + $0x4a0] ss:$16 sps:$4 sm:$0xff]  }
  0x5c   :  { %2474 = vmatprep.subr.bf16.mxu0 %v4284_v40  ;;  %2720 = vmatprep.subr.bf16.mxu1 %v4287_v41  ;;  %v4369_v40 = vld [vmem:[%s6333_s1 + $0x4a8] ss:$16 sps:$4 sm:$0xff]   ;;  %v4374_v41 = vld [vmem:[%s6333_s1 + $0x4c4] ss:$16 sps:$4 sm:$0xff]  }
  0x5f   :  { %2475 = vmatpush1.bf16.msra.mxu0 %v4282_v42  ;;  %2721 = vmatpush1.bf16.msra.mxu1 %v4285_v44  ;;  %v4377_v42 = vld [vmem:[%s6333_s1 + $0x4cc] ss:$16 sps:$4 sm:$0xff]   ;;  %v4372_v44 = vld [vmem:[%s6333_s1 + $0x4c0] ss:$16 sps:$4 sm:$0xff]  }
  0x60   :  { %2476 = vmatprep.subr.bf16.mxu0 %v4290_v45  ;;  %2722 = vmatprep.subr.bf16.mxu1 %v4293_v46  ;;  %v4375_v45 = vld [vmem:[%s6333_s1 + $0x4c8] ss:$16 sps:$4 sm:$0xff]   ;;  %v4380_v46 = vld [vmem:[%s6333_s1 + $0x4e4] ss:$16 sps:$4 sm:$0xff]  }
  0x63   :  { %2477 = vmatpush1.bf16.msra.mxu0 %v4288_v47  ;;  %2723 = vmatpush1.bf16.msra.mxu1 %v4291_v48  ;;  %v4383_v47 = vld [vmem:[%s6333_s1 + $0x4ec] ss:$16 sps:$4 sm:$0xff]   ;;  %v4378_v48 = vld [vmem:[%s6333_s1 + $0x4e0] ss:$16 sps:$4 sm:$0xff]  }
  0x64   :  { %2478 = vmatprep.subr.bf16.mxu0 %v4296_v50  ;;  %2724 = vmatprep.subr.bf16.mxu1 %v4299_v51  ;;  %v4381_v50 = vld [vmem:[%s6333_s1 + $0x4e8] ss:$16 sps:$4 sm:$0xff]   ;;  %v4386_v51 = vld [vmem:[%s6333_s1 + $0x504] ss:$16 sps:$4 sm:$0xff]  }
  0x67   :  { %2479 = vmatpush1.bf16.msra.mxu0 %v4294_v52  ;;  %2725 = vmatpush1.bf16.msra.mxu1 %v4297_v53  ;;  %v4389_v52 = vld [vmem:[%s6333_s1 + $0x50c] ss:$16 sps:$4 sm:$0xff]   ;;  %v4384_v53 = vld [vmem:[%s6333_s1 + $0x500] ss:$16 sps:$4 sm:$0xff]  }
  0x68   :  { %2480 = vmatprep.subr.bf16.mxu0 %v4302_v54  ;;  %2726 = vmatprep.subr.bf16.mxu1 %v4305_v55  ;;  %v4387_v54 = vld [vmem:[%s6333_s1 + $0x508] ss:$16 sps:$4 sm:$0xff]   ;;  %v4392_v55 = vld [vmem:[%s6333_s1 + $0x524] ss:$16 sps:$4 sm:$0xff]  }
  0x6b   :  { %2481 = vmatpush1.bf16.msra.mxu0 %v4300_v56  ;;  %2727 = vmatpush1.bf16.msra.mxu1 %v4303_v57  ;;  %v4395_v56 = vld [vmem:[%s6333_s1 + $0x52c] ss:$16 sps:$4 sm:$0xff]   ;;  %v4390_v57 = vld [vmem:[%s6333_s1 + $0x520] ss:$16 sps:$4 sm:$0xff]  }
  0x6c   :  { %2482 = vmatprep.subr.bf16.mxu0 %v4308_v58  ;;  %2728 = vmatprep.subr.bf16.mxu1 %v4311_v59  ;;  %v4393_v58 = vld [vmem:[%s6333_s1 + $0x528] ss:$16 sps:$4 sm:$0xff]   ;;  %v4398_v59 = vld [vmem:[%s6333_s1 + $0x544] ss:$16 sps:$4 sm:$0xff]  }
  0x6f   :  { %2483 = vmatpush1.bf16.msra.mxu0 %v4306_v60  ;;  %2729 = vmatpush1.bf16.msra.mxu1 %v4309_v61  ;;  %v4401_v60 = vld [vmem:[%s6333_s1 + $0x54c] ss:$16 sps:$4 sm:$0xff]   ;;  %v4396_v61 = vld [vmem:[%s6333_s1 + $0x540] ss:$16 sps:$4 sm:$0xff]  }
  0x70   :  { %2484 = vmatprep.subr.bf16.mxu0 %v4314_v62  ;;  %2730 = vmatprep.subr.bf16.mxu1 %v4317_v63  ;;  %v4399_v62 = vld [vmem:[%s6333_s1 + $0x548] ss:$16 sps:$4 sm:$0xff]   ;;  %v4404_v63 = vld [vmem:[%s6333_s1 + $0x564] ss:$16 sps:$4 sm:$0xff]  }
  0x73   :  { %2485 = vmatpush1.bf16.msra.mxu0 %v4312_v0  ;;  %2731 = vmatpush1.bf16.msra.mxu1 %v4315_v1  ;;  %v4407_v0 = vld [vmem:[%s6333_s1 + $0x56c] ss:$16 sps:$4 sm:$0xff]   ;;  %v4402_v1 = vld [vmem:[%s6333_s1 + $0x560] ss:$16 sps:$4 sm:$0xff]  }
  0x74   :  { %2486 = vmatprep.subr.bf16.mxu0 %v4320_v2  ;;  %2732 = vmatprep.subr.bf16.mxu1 %v4323_v3  ;;  %v4405_v2 = vld [vmem:[%s6333_s1 + $0x568] ss:$16 sps:$4 sm:$0xff]   ;;  %v4410_v3 = vld [vmem:[%s6333_s1 + $0x584] ss:$16 sps:$4 sm:$0xff]  }
  0x77   :  { %2487 = vmatpush1.bf16.msra.mxu0 %v4318_v4  ;;  %2733 = vmatpush1.bf16.msra.mxu1 %v4321_v5  ;;  %v4413_v4 = vld [vmem:[%s6333_s1 + $0x58c] ss:$16 sps:$4 sm:$0xff]   ;;  %v4408_v5 = vld [vmem:[%s6333_s1 + $0x580] ss:$16 sps:$4 sm:$0xff]  }
  0x78   :  { %2488 = vmatprep.subr.bf16.mxu0 %v4326_v6  ;;  %2734 = vmatprep.subr.bf16.mxu1 %v4329_v7  ;;  %v4411_v6 = vld [vmem:[%s6333_s1 + $0x588] ss:$16 sps:$4 sm:$0xff]   ;;  %v4416_v7 = vld [vmem:[%s6333_s1 + $0x5a4] ss:$16 sps:$4 sm:$0xff]  }
  0x7b   :  { %2489 = vmatpush1.bf16.msra.mxu0 %v4324_v8  ;;  %2735 = vmatpush1.bf16.msra.mxu1 %v4327_v9  ;;  %v4419_v8 = vld [vmem:[%s6333_s1 + $0x5ac] ss:$16 sps:$4 sm:$0xff]   ;;  %v4414_v9 = vld [vmem:[%s6333_s1 + $0x5a0] ss:$16 sps:$4 sm:$0xff]  }
  0x7c   :  { %2490 = vmatprep.subr.bf16.mxu0 %v4332_v10  ;;  %2736 = vmatprep.subr.bf16.mxu1 %v4335_v11  ;;  %v4417_v10 = vld [vmem:[%s6333_s1 + $0x5a8] ss:$16 sps:$4 sm:$0xff]   ;;  %v4422_v11 = vld [vmem:[%s6333_s1 + $0x5c4] ss:$16 sps:$4 sm:$0xff]  }
  0x7f   :  { %2491 = vmatpush1.bf16.msra.mxu0 %v4330_v13  ;;  %2737 = vmatpush1.bf16.msra.mxu1 %v4333_v14  ;;  %v4425_v13 = vld [vmem:[%s6333_s1 + $0x5cc] ss:$16 sps:$4 sm:$0xff]   ;;  %v4420_v14 = vld [vmem:[%s6333_s1 + $0x5c0] ss:$16 sps:$4 sm:$0xff]  }
  0x80   :  { %2501 = vmatprep.subr.bf16.mxu0 %v4338_v15  ;;  %2747 = vmatprep.subr.bf16.mxu1 %v4341_v16  ;;  %v4423_v15 = vld [vmem:[%s6333_s1 + $0x5c8] ss:$16 sps:$4 sm:$0xff]   ;;  %v4428_v16 = vld [vmem:[%s6333_s1 + $0x5e4] ss:$16 sps:$4 sm:$0xff]  }
  0x82   :  { %2493 = vmatmul.mubr.bf16.vlgmr.msra.gmra.mrb[0].mxu0 %v5113_v12  ;;  %2739 = vmatmul.mubr.bf16.vlgmr.msra.gmra.mrb[0].mxu1 %v5113_v12  ;;  %v4353_v12 = vld [vmem:[%s6333_s1 + $0x44c] ss:$16 sps:$4 sm:$0xff]  }
  0x83   :  { %2502 = vmatpush1.bf16.msra.mxu0 %v4336_v17  ;;  %2748 = vmatpush1.bf16.msra.mxu1 %v4339_v18  ;;  %v4431_v17 = vld [vmem:[%s6333_s1 + $0x5ec] ss:$16 sps:$4 sm:$0xff]   ;;  %v453_v18 = vcombine.high %v5318_v19, %v5318_v19 }
  0x84   :  { %2503 = vmatprep.subr.bf16.mxu0 %v4344_v20  ;;  %2749 = vmatprep.subr.bf16.mxu1 %v4347_v21  ;;  %v4426_v20 = vld [vmem:[%s6333_s1 + $0x5e0] ss:$16 sps:$4 sm:$0xff]   ;;  %v4429_v21 = vld [vmem:[%s6333_s1 + $0x5e8] ss:$16 sps:$4 sm:$0xff]   ;;  %v4437_v19 = vld [vmem:[%s6333_s1 + $0x60c] ss:$16 sps:$4 sm:$0xff]  }
  0x85   :  { %2533 = vmatprep.mubr.bf16.mxu0 %v468_v23  ;;  %2779 = vmatprep.mubr.bf16.mxu1 %v468_v23  ;;  %v4434_v23 = vld [vmem:[%s6333_s1 + $0x604] ss:$16 sps:$4 sm:$0xff]  }
  0x87   :  { %2504 = vmatpush1.bf16.msra.mxu0 %v4342_v24  ;;  %2750 = vmatpush1.bf16.msra.mxu1 %v4345_v25  ;;  %v5517_v24 = vrot.slane %v453_v18, %v5040_v49  ;;  %v4432_v25 = vld [vmem:[%s6333_s1 + $0x600] ss:$16 sps:$4 sm:$0xff]   ;;  %v4521_v18 = vld [vmem:[%s6333_s1 + $0x7cc] ss:$16 sps:$4 sm:$0xff]  }
  0x88   :  { %2505 = vmatprep.subr.bf16.mxu0 %v4350_v26  ;;  %2751 = vmatprep.subr.bf16.mxu1 %v4353_v12  ;;  %v4435_v26 = vld [vmem:[%s6333_s1 + $0x608] ss:$16 sps:$4 sm:$0xff]   ;;  %v4440_v12 = vld [vmem:[%s6333_s1 + $0x624] ss:$16 sps:$4 sm:$0xff]  }
  0x8b   :  { %2506 = vmatpush1.bf16.msra.mxu0 %v4348_v27  ;;  %2752 = vmatpush1.bf16.msra.mxu1 %v4351_v28  ;;  %v4443_v27 = vld [vmem:[%s6333_s1 + $0x62c] ss:$16 sps:$4 sm:$0xff]   ;;  %v469_v28 = vcombine.high %v5517_v24, %v5517_v24 }
  0x8c   :  { %2507 = vmatprep.subr.bf16.mxu0 %v4356_v29  ;;  %2753 = vmatprep.subr.bf16.mxu1 %v4359_v30  ;;  %v4438_v29 = vld [vmem:[%s6333_s1 + $0x620] ss:$16 sps:$4 sm:$0xff]   ;;  %v4441_v30 = vld [vmem:[%s6333_s1 + $0x628] ss:$16 sps:$4 sm:$0xff]  }
  0x8f   :  { %2508 = vmatpush1.bf16.msra.mxu0 %v4354_v31  ;;  %2754 = vmatpush1.bf16.msra.mxu1 %v4357_v32  ;;  %v4446_v31 = vld [vmem:[%s6333_s1 + $0x644] ss:$16 sps:$4 sm:$0xff]   ;;  %v4444_v32 = vld [vmem:[%s6333_s1 + $0x640] ss:$16 sps:$4 sm:$0xff]  }
  0x90   :  { %2509 = vmatprep.subr.bf16.mxu0 %v4362_v33  ;;  %2755 = vmatprep.subr.bf16.mxu1 %v4365_v34  ;;  %v4447_v33 = vld [vmem:[%s6333_s1 + $0x648] ss:$16 sps:$4 sm:$0xff]   ;;  %v4452_v34 = vld [vmem:[%s6333_s1 + $0x664] ss:$16 sps:$4 sm:$0xff]  }
  0x93   :  { %2510 = vmatpush1.bf16.msra.mxu0 %v4360_v35  ;;  %2756 = vmatpush1.bf16.msra.mxu1 %v4363_v36  ;;  %v4455_v35 = vld [vmem:[%s6333_s1 + $0x66c] ss:$16 sps:$4 sm:$0xff]   ;;  %v4450_v36 = vld [vmem:[%s6333_s1 + $0x660] ss:$16 sps:$4 sm:$0xff]  }
  0x94   :  { %2511 = vmatprep.subr.bf16.mxu0 %v4368_v37  ;;  %2757 = vmatprep.subr.bf16.mxu1 %v4371_v38  ;;  %v4453_v37 = vld [vmem:[%s6333_s1 + $0x668] ss:$16 sps:$4 sm:$0xff]   ;;  %v4458_v38 = vld [vmem:[%s6333_s1 + $0x684] ss:$16 sps:$4 sm:$0xff]  }
  0x97   :  { %2512 = vmatpush1.bf16.msra.mxu0 %v4366_v39  ;;  %2758 = vmatpush1.bf16.msra.mxu1 %v4369_v40  ;;  %v4461_v39 = vld [vmem:[%s6333_s1 + $0x68c] ss:$16 sps:$4 sm:$0xff]   ;;  %v4456_v40 = vld [vmem:[%s6333_s1 + $0x680] ss:$16 sps:$4 sm:$0xff]  }
  0x98   :  { %2513 = vmatprep.subr.bf16.mxu0 %v4374_v41  ;;  %2759 = vmatprep.subr.bf16.mxu1 %v4377_v42  ;;  %v4459_v41 = vld [vmem:[%s6333_s1 + $0x688] ss:$16 sps:$4 sm:$0xff]   ;;  %v4464_v42 = vld [vmem:[%s6333_s1 + $0x6a4] ss:$16 sps:$4 sm:$0xff]  }
  0x9b   :  { %2514 = vmatpush1.bf16.msra.mxu0 %v4372_v44  ;;  %2760 = vmatpush1.bf16.msra.mxu1 %v4375_v45  ;;  %v4467_v44 = vld [vmem:[%s6333_s1 + $0x6ac] ss:$16 sps:$4 sm:$0xff]   ;;  %v4462_v45 = vld [vmem:[%s6333_s1 + $0x6a0] ss:$16 sps:$4 sm:$0xff]  }
  0x9c   :  { %2515 = vmatprep.subr.bf16.mxu0 %v4380_v46  ;;  %2761 = vmatprep.subr.bf16.mxu1 %v4383_v47  ;;  %v4465_v46 = vld [vmem:[%s6333_s1 + $0x6a8] ss:$16 sps:$4 sm:$0xff]   ;;  %v4470_v47 = vld [vmem:[%s6333_s1 + $0x6c4] ss:$16 sps:$4 sm:$0xff]  }
  0x9f   :  { %2516 = vmatpush1.bf16.msra.mxu0 %v4378_v48  ;;  %2762 = vmatpush1.bf16.msra.mxu1 %v4381_v50  ;;  %v4473_v48 = vld [vmem:[%s6333_s1 + $0x6cc] ss:$16 sps:$4 sm:$0xff]   ;;  %v4468_v50 = vld [vmem:[%s6333_s1 + $0x6c0] ss:$16 sps:$4 sm:$0xff]  }
  0xa0   :  { %2517 = vmatprep.subr.bf16.mxu0 %v4386_v51  ;;  %2763 = vmatprep.subr.bf16.mxu1 %v4389_v52  ;;  %v4471_v51 = vld [vmem:[%s6333_s1 + $0x6c8] ss:$16 sps:$4 sm:$0xff]   ;;  %v4476_v52 = vld [vmem:[%s6333_s1 + $0x6e4] ss:$16 sps:$4 sm:$0xff]  }
  0xa3   :  { %2518 = vmatpush1.bf16.msra.mxu0 %v4384_v53  ;;  %2764 = vmatpush1.bf16.msra.mxu1 %v4387_v54  ;;  %v4479_v53 = vld [vmem:[%s6333_s1 + $0x6ec] ss:$16 sps:$4 sm:$0xff]   ;;  %v4474_v54 = vld [vmem:[%s6333_s1 + $0x6e0] ss:$16 sps:$4 sm:$0xff]  }
  0xa4   :  { %2519 = vmatprep.subr.bf16.mxu0 %v4392_v55  ;;  %2765 = vmatprep.subr.bf16.mxu1 %v4395_v56  ;;  %v4477_v55 = vld [vmem:[%s6333_s1 + $0x6e8] ss:$16 sps:$4 sm:$0xff]   ;;  %v4482_v56 = vld [vmem:[%s6333_s1 + $0x704] ss:$16 sps:$4 sm:$0xff]  }
  0xa7   :  { %2520 = vmatpush1.bf16.msra.mxu0 %v4390_v57  ;;  %2766 = vmatpush1.bf16.msra.mxu1 %v4393_v58  ;;  %v4485_v57 = vld [vmem:[%s6333_s1 + $0x70c] ss:$16 sps:$4 sm:$0xff]   ;;  %v4480_v58 = vld [vmem:[%s6333_s1 + $0x700] ss:$16 sps:$4 sm:$0xff]  }
  0xa8   :  { %2521 = vmatprep.subr.bf16.mxu0 %v4398_v59  ;;  %2767 = vmatprep.subr.bf16.mxu1 %v4401_v60  ;;  %v4483_v59 = vld [vmem:[%s6333_s1 + $0x708] ss:$16 sps:$4 sm:$0xff]   ;;  %v4488_v60 = vld [vmem:[%s6333_s1 + $0x724] ss:$16 sps:$4 sm:$0xff]  }
  0xab   :  { %2522 = vmatpush1.bf16.msra.mxu0 %v4396_v61  ;;  %2768 = vmatpush1.bf16.msra.mxu1 %v4399_v62  ;;  %v4491_v61 = vld [vmem:[%s6333_s1 + $0x72c] ss:$16 sps:$4 sm:$0xff]   ;;  %v4486_v62 = vld [vmem:[%s6333_s1 + $0x720] ss:$16 sps:$4 sm:$0xff]  }
  0xac   :  { %2523 = vmatprep.subr.bf16.mxu0 %v4404_v63  ;;  %2769 = vmatprep.subr.bf16.mxu1 %v4407_v0  ;;  %v4489_v63 = vld [vmem:[%s6333_s1 + $0x728] ss:$16 sps:$4 sm:$0xff]   ;;  %v4494_v0 = vld [vmem:[%s6333_s1 + $0x744] ss:$16 sps:$4 sm:$0xff]  }
  0xaf   :  { %2524 = vmatpush1.bf16.msra.mxu0 %v4402_v1  ;;  %2770 = vmatpush1.bf16.msra.mxu1 %v4405_v2  ;;  %v4497_v1 = vld [vmem:[%s6333_s1 + $0x74c] ss:$16 sps:$4 sm:$0xff]   ;;  %v4492_v2 = vld [vmem:[%s6333_s1 + $0x740] ss:$16 sps:$4 sm:$0xff]  }
  0xb0   :  { %2525 = vmatprep.subr.bf16.mxu0 %v4410_v3  ;;  %2771 = vmatprep.subr.bf16.mxu1 %v4413_v4  ;;  %v4495_v3 = vld [vmem:[%s6333_s1 + $0x748] ss:$16 sps:$4 sm:$0xff]   ;;  %v4500_v4 = vld [vmem:[%s6333_s1 + $0x764] ss:$16 sps:$4 sm:$0xff]  }
  0xb3   :  { %2526 = vmatpush1.bf16.msra.mxu0 %v4408_v5  ;;  %2772 = vmatpush1.bf16.msra.mxu1 %v4411_v6  ;;  %v4503_v5 = vld [vmem:[%s6333_s1 + $0x76c] ss:$16 sps:$4 sm:$0xff]   ;;  %v4498_v6 = vld [vmem:[%s6333_s1 + $0x760] ss:$16 sps:$4 sm:$0xff]  }
  0xb4   :  { %2527 = vmatprep.subr.bf16.mxu0 %v4416_v7  ;;  %2773 = vmatprep.subr.bf16.mxu1 %v4419_v8  ;;  %v4501_v7 = vld [vmem:[%s6333_s1 + $0x768] ss:$16 sps:$4 sm:$0xff]   ;;  %v4506_v8 = vld [vmem:[%s6333_s1 + $0x784] ss:$16 sps:$4 sm:$0xff]  }
  0xb7   :  { %2528 = vmatpush1.bf16.msra.mxu0 %v4414_v9  ;;  %2774 = vmatpush1.bf16.msra.mxu1 %v4417_v10  ;;  %v4509_v9 = vld [vmem:[%s6333_s1 + $0x78c] ss:$16 sps:$4 sm:$0xff]   ;;  %v4504_v10 = vld [vmem:[%s6333_s1 + $0x780] ss:$16 sps:$4 sm:$0xff]  }
  0xb8   :  { %2529 = vmatprep.subr.bf16.mxu0 %v4422_v11  ;;  %2775 = vmatprep.subr.bf16.mxu1 %v4425_v13  ;;  %v4507_v11 = vld [vmem:[%s6333_s1 + $0x788] ss:$16 sps:$4 sm:$0xff]   ;;  %v4512_v13 = vld [vmem:[%s6333_s1 + $0x7a4] ss:$16 sps:$4 sm:$0xff]  }
  0xbb   :  { %2530 = vmatpush1.bf16.msra.mxu0 %v4420_v14  ;;  %2776 = vmatpush1.bf16.msra.mxu1 %v4423_v15  ;;  %v4515_v14 = vld [vmem:[%s6333_s1 + $0x7ac] ss:$16 sps:$4 sm:$0xff]   ;;  %v4510_v15 = vld [vmem:[%s6333_s1 + $0x7a0] ss:$16 sps:$4 sm:$0xff]  }
  0xbc   :  { %2531 = vmatprep.subr.bf16.mxu0 %v4428_v16  ;;  %2777 = vmatprep.subr.bf16.mxu1 %v4431_v17  ;;  %v4513_v16 = vld [vmem:[%s6333_s1 + $0x7a8] ss:$16 sps:$4 sm:$0xff]   ;;  %v4518_v17 = vld [vmem:[%s6333_s1 + $0x7c4] ss:$16 sps:$4 sm:$0xff]  }
  0xbf   :  { %2532 = vmatpush1.bf16.msra.mxu0 %v4426_v20  ;;  %2778 = vmatpush1.bf16.msra.mxu1 %v4429_v21  ;;  %v4516_v20 = vld [vmem:[%s6333_s1 + $0x7c0] ss:$16 sps:$4 sm:$0xff]   ;;  %v4519_v21 = vld [vmem:[%s6333_s1 + $0x7c8] ss:$16 sps:$4 sm:$0xff]  }
  0xc0   :  { %2542 = vmatprep.subr.bf16.mxu0 %v4434_v23  ;;  %2788 = vmatprep.subr.bf16.mxu1 %v4437_v19  ;;  %v4524_v23 = vld [vmem:[%s6333_s1 + $0x7e4] ss:$16 sps:$4 sm:$0xff]   ;;  %v4527_v19 = vld [vmem:[%s6333_s1 + $0x7ec] ss:$16 sps:$4 sm:$0xff]  }
  0xc2   :  { %2534 = vmatmul.mubr.bf16.vlgmr.msra.gmra.mrb[0].mxu0 %v5328_v22  ;;  %2780 = vmatmul.mubr.bf16.vlgmr.msra.gmra.mrb[0].mxu1 %v5328_v22  ;;  %v4449_v22 = vld [vmem:[%s6333_s1 + $0x64c] ss:$16 sps:$4 sm:$0xff]  }
  0xc3   :  { %2543 = vmatpush1.bf16.msra.mxu0 %v4432_v25  ;;  %2789 = vmatpush1.bf16.msra.mxu1 %v4435_v26  ;;  %v4522_v25 = vld [vmem:[%s6333_s1 + $0x7e0] ss:$16 sps:$4 sm:$0xff]  }
  0xc4   :  { %2544 = vmatprep.subr.bf16.mxu0 %v4440_v12  ;;  %2790 = vmatprep.subr.bf16.mxu1 %v4443_v27  ;;  %v5709_v26 = vld [vmem:[%s6332_s0 + $0x10] sm:$0xff]  ;;  %v4525_v12 = vld [vmem:[%s6333_s1 + $0x7e8] ss:$16 sps:$4 sm:$0xff]  }
  0xc5   :  { %2574 = vmatprep.mubr.bf16.mxu0 %v469_v28  ;;  %2820 = vmatprep.mubr.bf16.mxu1 %v469_v28  ;;  %v4531_v27 = vld [vmem:[%s6333_s1 + $0x804] ss:$16 sps:$4 sm:$0xff]   ;;  %v4534_v28 = vld [vmem:[%s6333_s1 + $0x80c] ss:$16 sps:$4 sm:$0xff]  }
  0xc7   :  { %2545 = vmatpush1.bf16.msra.mxu0 %v4438_v29  ;;  %2791 = vmatpush1.bf16.msra.mxu1 %v4441_v30  ;;  %v5722_v29 = vrot.slane %v5709_v26, %v5040_v49  ;;  %v4529_v30 = vld [vmem:[%s6333_s1 + $0x800] ss:$16 sps:$4 sm:$0xff]  }
  0xc8   :  { %2546 = vmatprep.subr.bf16.mxu0 %v4446_v31  ;;  %2792 = vmatprep.subr.bf16.mxu1 %v4449_v22  ;;  %v4532_v31 = vld [vmem:[%s6333_s1 + $0x808] ss:$16 sps:$4 sm:$0xff]   ;;  %v4537_v22 = vld [vmem:[%s6333_s1 + $0x824] ss:$16 sps:$4 sm:$0xff]  }
  0xcb   :  { %2547 = vmatpush1.bf16.msra.mxu0 %v4444_v32  ;;  %2793 = vmatpush1.bf16.msra.mxu1 %v4447_v33  ;;  %v4540_v32 = vld [vmem:[%s6333_s1 + $0x82c] ss:$16 sps:$4 sm:$0xff]   ;;  %v485_v33 = vcombine.high %v5722_v29, %v5722_v29 }
  0xcc   :  { %2548 = vmatprep.subr.bf16.mxu0 %v4452_v34  ;;  %2794 = vmatprep.subr.bf16.mxu1 %v4455_v35  ;;  %v4535_v34 = vld [vmem:[%s6333_s1 + $0x820] ss:$16 sps:$4 sm:$0xff]   ;;  %v4538_v35 = vld [vmem:[%s6333_s1 + $0x828] ss:$16 sps:$4 sm:$0xff]  }
  0xcf   :  { %2549 = vmatpush1.bf16.msra.mxu0 %v4450_v36  ;;  %2795 = vmatpush1.bf16.msra.mxu1 %v4453_v37  ;;  %v4543_v36 = vld [vmem:[%s6333_s1 + $0x844] ss:$16 sps:$4 sm:$0xff]   ;;  %v4546_v37 = vld [vmem:[%s6333_s1 + $0x84c] ss:$16 sps:$4 sm:$0xff]  }
  0xd0   :  { %2550 = vmatprep.subr.bf16.mxu0 %v4458_v38  ;;  %2796 = vmatprep.subr.bf16.mxu1 %v4461_v39  ;;  %v4544_v38 = vld [vmem:[%s6333_s1 + $0x848] ss:$16 sps:$4 sm:$0xff]   ;;  %v4549_v39 = vld [vmem:[%s6333_s1 + $0x864] ss:$16 sps:$4 sm:$0xff]  }
  0xd3   :  { %2551 = vmatpush1.bf16.msra.mxu0 %v4456_v40  ;;  %2797 = vmatpush1.bf16.msra.mxu1 %v4459_v41  ;;  %v4552_v40 = vld [vmem:[%s6333_s1 + $0x86c] ss:$16 sps:$4 sm:$0xff]   ;;  %v4547_v41 = vld [vmem:[%s6333_s1 + $0x860] ss:$16 sps:$4 sm:$0xff]  }
  0xd4   :  { %2552 = vmatprep.subr.bf16.mxu0 %v4464_v42  ;;  %2798 = vmatprep.subr.bf16.mxu1 %v4467_v44  ;;  %v4550_v42 = vld [vmem:[%s6333_s1 + $0x868] ss:$16 sps:$4 sm:$0xff]   ;;  %v4555_v44 = vld [vmem:[%s6333_s1 + $0x884] ss:$16 sps:$4 sm:$0xff]  }
  0xd7   :  { %2553 = vmatpush1.bf16.msra.mxu0 %v4462_v45  ;;  %2799 = vmatpush1.bf16.msra.mxu1 %v4465_v46  ;;  %v4558_v45 = vld [vmem:[%s6333_s1 + $0x88c] ss:$16 sps:$4 sm:$0xff]   ;;  %v4553_v46 = vld [vmem:[%s6333_s1 + $0x880] ss:$16 sps:$4 sm:$0xff]  }
  0xd8   :  { %2554 = vmatprep.subr.bf16.mxu0 %v4470_v47  ;;  %2800 = vmatprep.subr.bf16.mxu1 %v4473_v48  ;;  %v4556_v47 = vld [vmem:[%s6333_s1 + $0x888] ss:$16 sps:$4 sm:$0xff]   ;;  %v4561_v48 = vld [vmem:[%s6333_s1 + $0x8a4] ss:$16 sps:$4 sm:$0xff]  }
  0xdb   :  { %2555 = vmatpush1.bf16.msra.mxu0 %v4468_v50  ;;  %2801 = vmatpush1.bf16.msra.mxu1 %v4471_v51  ;;  %v4564_v50 = vld [vmem:[%s6333_s1 + $0x8ac] ss:$16 sps:$4 sm:$0xff]   ;;  %v4559_v51 = vld [vmem:[%s6333_s1 + $0x8a0] ss:$16 sps:$4 sm:$0xff]  }
  0xdc   :  { %2556 = vmatprep.subr.bf16.mxu0 %v4476_v52  ;;  %2802 = vmatprep.subr.bf16.mxu1 %v4479_v53  ;;  %v4562_v52 = vld [vmem:[%s6333_s1 + $0x8a8] ss:$16 sps:$4 sm:$0xff]   ;;  %v4567_v53 = vld [vmem:[%s6333_s1 + $0x8c4] ss:$16 sps:$4 sm:$0xff]  }
  0xdf   :  { %2557 = vmatpush1.bf16.msra.mxu0 %v4474_v54  ;;  %2803 = vmatpush1.bf16.msra.mxu1 %v4477_v55  ;;  %v4570_v54 = vld [vmem:[%s6333_s1 + $0x8cc] ss:$16 sps:$4 sm:$0xff]   ;;  %v4565_v55 = vld [vmem:[%s6333_s1 + $0x8c0] ss:$16 sps:$4 sm:$0xff]  }
  0xe0   :  { %2558 = vmatprep.subr.bf16.mxu0 %v4482_v56  ;;  %2804 = vmatprep.subr.bf16.mxu1 %v4485_v57  ;;  %v4568_v56 = vld [vmem:[%s6333_s1 + $0x8c8] ss:$16 sps:$4 sm:$0xff]   ;;  %v4573_v57 = vld [vmem:[%s6333_s1 + $0x8e4] ss:$16 sps:$4 sm:$0xff]  }
  0xe3   :  { %2559 = vmatpush1.bf16.msra.mxu0 %v4480_v58  ;;  %2805 = vmatpush1.bf16.msra.mxu1 %v4483_v59  ;;  %v4576_v58 = vld [vmem:[%s6333_s1 + $0x8ec] ss:$16 sps:$4 sm:$0xff]   ;;  %v4571_v59 = vld [vmem:[%s6333_s1 + $0x8e0] ss:$16 sps:$4 sm:$0xff]  }
  0xe4   :  { %2560 = vmatprep.subr.bf16.mxu0 %v4488_v60  ;;  %2806 = vmatprep.subr.bf16.mxu1 %v4491_v61  ;;  %v4574_v60 = vld [vmem:[%s6333_s1 + $0x8e8] ss:$16 sps:$4 sm:$0xff]   ;;  %v4579_v61 = vld [vmem:[%s6333_s1 + $0x904] ss:$16 sps:$4 sm:$0xff]  }
  0xe7   :  { %2561 = vmatpush1.bf16.msra.mxu0 %v4486_v62  ;;  %2807 = vmatpush1.bf16.msra.mxu1 %v4489_v63  ;;  %v4582_v62 = vld [vmem:[%s6333_s1 + $0x90c] ss:$16 sps:$4 sm:$0xff]  }
  0xe8   :  { %2562 = vmatprep.subr.bf16.mxu0 %v4494_v0  ;;  %2808 = vmatprep.subr.bf16.mxu1 %v4497_v1 }
  0xeb   :  { %2563 = vmatpush1.bf16.msra.mxu0 %v4492_v2  ;;  %2809 = vmatpush1.bf16.msra.mxu1 %v4495_v3 }
  0xec   :  { %2564 = vmatprep.subr.bf16.mxu0 %v4500_v4  ;;  %2810 = vmatprep.subr.bf16.mxu1 %v4503_v5 }
  0xef   :  { %2565 = vmatpush1.bf16.msra.mxu0 %v4498_v6  ;;  %2811 = vmatpush1.bf16.msra.mxu1 %v4501_v7 }
  0xf0   :  { %2566 = vmatprep.subr.bf16.mxu0 %v4506_v8  ;;  %2812 = vmatprep.subr.bf16.mxu1 %v4509_v9 }
  0xf3   :  { %2567 = vmatpush1.bf16.msra.mxu0 %v4504_v10  ;;  %2813 = vmatpush1.bf16.msra.mxu1 %v4507_v11 }
  0xf4   :  { %2568 = vmatprep.subr.bf16.mxu0 %v4512_v13  ;;  %2814 = vmatprep.subr.bf16.mxu1 %v4515_v14 }
  0xf7   :  { %2569 = vmatpush1.bf16.msra.mxu0 %v4510_v15  ;;  %2815 = vmatpush1.bf16.msra.mxu1 %v4513_v16 }
  0xf8   :  { %2570 = vmatprep.subr.bf16.mxu0 %v4518_v17  ;;  %2816 = vmatprep.subr.bf16.mxu1 %v4521_v18 }
  0xfb   :  { %2571 = vmatpush1.bf16.msra.mxu0 %v4516_v20  ;;  %2817 = vmatpush1.bf16.msra.mxu1 %v4519_v21 }
  0xfc   :  { %2572 = vmatprep.subr.bf16.mxu0 %v4524_v23  ;;  %2818 = vmatprep.subr.bf16.mxu1 %v4527_v19 }
  0xff   :  { %2573 = vmatpush1.bf16.msra.mxu0 %v4522_v25  ;;  %2819 = vmatpush1.bf16.msra.mxu1 %v4525_v12 }
 0x100   :  { %2583 = vmatprep.subr.bf16.mxu0 %v4531_v27  ;;  %2829 = vmatprep.subr.bf16.mxu1 %v4534_v28 }
 0x102   :  { %2575 = vmatmul.mubr.bf16.vlgmr.msra.gmra.mrb[0].mxu0 %v5517_v24  ;;  %2821 = vmatmul.mubr.bf16.vlgmr.msra.gmra.mrb[0].mxu1 %v5517_v24  ;;  %v4541_v24 = vld [vmem:[%s6333_s1 + $0x840] ss:$16 sps:$4 sm:$0xff]  }
 0x103   :  { %2584 = vmatpush1.bf16.msra.mxu0 %v4529_v30  ;;  %2830 = vmatpush1.bf16.msra.mxu1 %v4532_v31 }
 0x104   :  { %2585 = vmatprep.subr.bf16.mxu0 %v4537_v22  ;;  %2831 = vmatprep.subr.bf16.mxu1 %v4540_v32 }
 0x105   :  { %2615 = vmatprep.mubr.bf16.mxu0 %v485_v33  ;;  %2861 = vmatprep.mubr.bf16.mxu1 %v485_v33 }
 0x107   :  { %2586 = vmatpush1.bf16.msra.mxu0 %v4535_v34  ;;  %2832 = vmatpush1.bf16.msra.mxu1 %v4538_v35 }
 0x108   :  { %2587 = vmatprep.subr.bf16.mxu0 %v4543_v36  ;;  %2833 = vmatprep.subr.bf16.mxu1 %v4546_v37 }
 0x10b   :  { %2588 = vmatpush1.bf16.msra.mxu0 %v4541_v24  ;;  %2834 = vmatpush1.bf16.msra.mxu1 %v4544_v38 }
 0x10c   :  { %2589 = vmatprep.subr.bf16.mxu0 %v4549_v39  ;;  %2835 = vmatprep.subr.bf16.mxu1 %v4552_v40 }
 0x10f   :  { %2590 = vmatpush1.bf16.msra.mxu0 %v4547_v41  ;;  %2836 = vmatpush1.bf16.msra.mxu1 %v4550_v42 }
 0x110   :  { %2591 = vmatprep.subr.bf16.mxu0 %v4555_v44  ;;  %2837 = vmatprep.subr.bf16.mxu1 %v4558_v45 }
 0x113   :  { %2592 = vmatpush1.bf16.msra.mxu0 %v4553_v46  ;;  %2838 = vmatpush1.bf16.msra.mxu1 %v4556_v47 }
 0x114   :  { %2593 = vmatprep.subr.bf16.mxu0 %v4561_v48  ;;  %2839 = vmatprep.subr.bf16.mxu1 %v4564_v50 }
 0x117   :  { %2594 = vmatpush1.bf16.msra.mxu0 %v4559_v51  ;;  %2840 = vmatpush1.bf16.msra.mxu1 %v4562_v52 }
 0x118   :  { %2595 = vmatprep.subr.bf16.mxu0 %v4567_v53  ;;  %2841 = vmatprep.subr.bf16.mxu1 %v4570_v54 }
 0x11b   :  { %2596 = vmatpush1.bf16.msra.mxu0 %v4565_v55  ;;  %2842 = vmatpush1.bf16.msra.mxu1 %v4568_v56 }
 0x11c   :  { %2597 = vmatprep.subr.bf16.mxu0 %v4573_v57  ;;  %2843 = vmatprep.subr.bf16.mxu1 %v4576_v58 }
 0x11d   :  { %18 = vsyncpa [#allocation3], 0  ;;  %v4577_v63 = vld [vmem:[%s6333_s1 + $0x900] ss:$16 sps:$4 sm:$0xff]   ;;  %v4580_v0 = vld [vmem:[%s6333_s1 + $0x908] ss:$16 sps:$4 sm:$0xff]   ;;  %v470_v31 = vcombine.high %v5709_v26, %v5709_v26 }
 0x11e   :  { %v4585_v1 = vld [vmem:[%s6333_s1 + $0x924] ss:$16 sps:$4 sm:$0xff]   ;;  %v4588_v2 = vld [vmem:[%s6333_s1 + $0x92c] ss:$16 sps:$4 sm:$0xff]   ;;  %v4583_v3 = vld [vmem:[%s6333_s1 + $0x920] ss:$16 sps:$4 sm:$0xff]  }
 0x11f   :  { %2598 = vmatpush1.bf16.msra.mxu0 %v4571_v59  ;;  %2844 = vmatpush1.bf16.msra.mxu1 %v4574_v60  ;;  %v4586_v4 = vld [vmem:[%s6333_s1 + $0x928] ss:$16 sps:$4 sm:$0xff]   ;;  %v4591_v5 = vld [vmem:[%s6333_s1 + $0x944] ss:$16 sps:$4 sm:$0xff]   ;;  %v4594_v6 = vld [vmem:[%s6333_s1 + $0x94c] ss:$16 sps:$4 sm:$0xff]   ;;  %v5923_v34 = vrot.slane %v470_v31, %v5040_v49 }
 0x120   :  { %2599 = vmatprep.subr.bf16.mxu0 %v4579_v61  ;;  %2845 = vmatprep.subr.bf16.mxu1 %v4582_v62  ;;  %v4589_v7 = vld [vmem:[%s6333_s1 + $0x940] ss:$16 sps:$4 sm:$0xff]   ;;  %v4592_v8 = vld [vmem:[%s6333_s1 + $0x948] ss:$16 sps:$4 sm:$0xff]   ;;  %v4597_v9 = vld [vmem:[%s6333_s1 + $0x964] ss:$16 sps:$4 sm:$0xff]  }
 0x121   :  { %v4600_v10 = vld [vmem:[%s6333_s1 + $0x96c] ss:$16 sps:$4 sm:$0xff]   ;;  %v4595_v11 = vld [vmem:[%s6333_s1 + $0x960] ss:$16 sps:$4 sm:$0xff]   ;;  %v4598_v13 = vld [vmem:[%s6333_s1 + $0x968] ss:$16 sps:$4 sm:$0xff]   ;;  %v486_v24 = vcombine.high %v5923_v34, %v5923_v34 }
 0x122   :  { %v4603_v14 = vld [vmem:[%s6333_s1 + $0x984] ss:$16 sps:$4 sm:$0xff]   ;;  %v4606_v15 = vld [vmem:[%s6333_s1 + $0x98c] ss:$16 sps:$4 sm:$0xff]   ;;  %v4601_v16 = vld [vmem:[%s6333_s1 + $0x980] ss:$16 sps:$4 sm:$0xff]  }
 0x123   :  { %2600 = vmatpush1.bf16.msra.mxu0 %v4577_v63  ;;  %2846 = vmatpush1.bf16.msra.mxu1 %v4580_v0  ;;  %v4604_v17 = vld [vmem:[%s6333_s1 + $0x988] ss:$16 sps:$4 sm:$0xff]   ;;  %v4609_v18 = vld [vmem:[%s6333_s1 + $0x9a4] ss:$16 sps:$4 sm:$0xff]   ;;  %v4612_v20 = vld [vmem:[%s6333_s1 + $0x9ac] ss:$16 sps:$4 sm:$0xff]  }
 0x124   :  { %2601 = vmatprep.subr.bf16.mxu0 %v4585_v1  ;;  %2847 = vmatprep.subr.bf16.mxu1 %v4588_v2  ;;  %v4607_v21 = vld [vmem:[%s6333_s1 + $0x9a0] ss:$16 sps:$4 sm:$0xff]   ;;  %v4610_v23 = vld [vmem:[%s6333_s1 + $0x9a8] ss:$16 sps:$4 sm:$0xff]   ;;  %v4615_v19 = vld [vmem:[%s6333_s1 + $0x9c4] ss:$16 sps:$4 sm:$0xff]  }
 0x125   :  { %v4618_v25 = vld [vmem:[%s6333_s1 + $0x9cc] ss:$16 sps:$4 sm:$0xff]   ;;  %v4613_v12 = vld [vmem:[%s6333_s1 + $0x9c0] ss:$16 sps:$4 sm:$0xff]   ;;  %v4616_v27 = vld [vmem:[%s6333_s1 + $0x9c8] ss:$16 sps:$4 sm:$0xff]  }
 0x126   :  { %v4621_v28 = vld [vmem:[%s6333_s1 + $0x9e4] ss:$16 sps:$4 sm:$0xff]   ;;  %v4624_v30 = vld [vmem:[%s6333_s1 + $0x9ec] ss:$16 sps:$4 sm:$0xff]   ;;  %v4619_v22 = vld [vmem:[%s6333_s1 + $0x9e0] ss:$16 sps:$4 sm:$0xff]  }
 0x127   :  { %2602 = vmatpush1.bf16.msra.mxu0 %v4583_v3  ;;  %2848 = vmatpush1.bf16.msra.mxu1 %v4586_v4  ;;  %v4622_v32 = vld [vmem:[%s6333_s1 + $0x9e8] ss:$16 sps:$4 sm:$0xff]   ;;  %v4627_v33 = vld [vmem:[%s6333_s1 + $0xa04] ss:$16 sps:$4 sm:$0xff]   ;;  %v4630_v26 = vld [vmem:[%s6333_s1 + $0xa0c] ss:$16 sps:$4 sm:$0xff]  }
 0x128   :  { %2603 = vmatprep.subr.bf16.mxu0 %v4591_v5  ;;  %2849 = vmatprep.subr.bf16.mxu1 %v4594_v6  ;;  %v4625_v35 = vld [vmem:[%s6333_s1 + $0xa00] ss:$16 sps:$4 sm:$0xff]   ;;  %v4628_v36 = vld [vmem:[%s6333_s1 + $0xa08] ss:$16 sps:$4 sm:$0xff]   ;;  %v4633_v37 = vld [vmem:[%s6333_s1 + $0xa24] ss:$16 sps:$4 sm:$0xff]  }
 0x129   :  { %v4636_v49 = vld [vmem:[%s6333_s1 + $0xa2c] ss:$16 sps:$4 sm:$0xff]   ;;  %v4631_v38 = vld [vmem:[%s6333_s1 + $0xa20] ss:$16 sps:$4 sm:$0xff]   ;;  %v4634_v39 = vld [vmem:[%s6333_s1 + $0xa28] ss:$16 sps:$4 sm:$0xff]  }
 0x12a   :  { %v4639_v40 = vld [vmem:[%s6333_s1 + $0xa44] ss:$16 sps:$4 sm:$0xff]   ;;  %v4637_v41 = vld [vmem:[%s6333_s1 + $0xa40] ss:$16 sps:$4 sm:$0xff]   ;;  %v4640_v42 = vld [vmem:[%s6333_s1 + $0xa48] ss:$16 sps:$4 sm:$0xff]  }
 0x12b   :  { %2604 = vmatpush1.bf16.msra.mxu0 %v4589_v7  ;;  %2850 = vmatpush1.bf16.msra.mxu1 %v4592_v8  ;;  %v4645_v44 = vld [vmem:[%s6333_s1 + $0xa64] ss:$16 sps:$4 sm:$0xff]   ;;  %v4648_v45 = vld [vmem:[%s6333_s1 + $0xa6c] ss:$16 sps:$4 sm:$0xff]   ;;  %v4643_v46 = vld [vmem:[%s6333_s1 + $0xa60] ss:$16 sps:$4 sm:$0xff]  }
 0x12c   :  { %2605 = vmatprep.subr.bf16.mxu0 %v4597_v9  ;;  %2851 = vmatprep.subr.bf16.mxu1 %v4600_v10  ;;  %v4646_v47 = vld [vmem:[%s6333_s1 + $0xa68] ss:$16 sps:$4 sm:$0xff]   ;;  %v4651_v48 = vld [vmem:[%s6333_s1 + $0xa84] ss:$16 sps:$4 sm:$0xff]   ;;  %v4654_v50 = vld [vmem:[%s6333_s1 + $0xa8c] ss:$16 sps:$4 sm:$0xff]  }
 0x12d   :  { %v4649_v51 = vld [vmem:[%s6333_s1 + $0xa80] ss:$16 sps:$4 sm:$0xff]   ;;  %v4652_v52 = vld [vmem:[%s6333_s1 + $0xa88] ss:$16 sps:$4 sm:$0xff]   ;;  %v4657_v53 = vld [vmem:[%s6333_s1 + $0xaa4] ss:$16 sps:$4 sm:$0xff]  }
 0x12e   :  { %v4660_v54 = vld [vmem:[%s6333_s1 + $0xaac] ss:$16 sps:$4 sm:$0xff]   ;;  %v4655_v55 = vld [vmem:[%s6333_s1 + $0xaa0] ss:$16 sps:$4 sm:$0xff]   ;;  %v4658_v56 = vld [vmem:[%s6333_s1 + $0xaa8] ss:$16 sps:$4 sm:$0xff]  }
 0x12f   :  { %2606 = vmatpush1.bf16.msra.mxu0 %v4595_v11  ;;  %2852 = vmatpush1.bf16.msra.mxu1 %v4598_v13  ;;  %v4663_v57 = vld [vmem:[%s6333_s1 + $0xac4] ss:$16 sps:$4 sm:$0xff]   ;;  %v4666_v58 = vld [vmem:[%s6333_s1 + $0xacc] ss:$16 sps:$4 sm:$0xff]   ;;  %v4661_v59 = vld [vmem:[%s6333_s1 + $0xac0] ss:$16 sps:$4 sm:$0xff]  }
 0x130   :  { %2607 = vmatprep.subr.bf16.mxu0 %v4603_v14  ;;  %2853 = vmatprep.subr.bf16.mxu1 %v4606_v15  ;;  %v4664_v60 = vld [vmem:[%s6333_s1 + $0xac8] ss:$16 sps:$4 sm:$0xff]   ;;  %v4669_v61 = vld [vmem:[%s6333_s1 + $0xae4] ss:$16 sps:$4 sm:$0xff]   ;;  %v4672_v62 = vld [vmem:[%s6333_s1 + $0xaec] ss:$16 sps:$4 sm:$0xff]  }
 0x131   :  { %v4667_v63 = vld [vmem:[%s6333_s1 + $0xae0] ss:$16 sps:$4 sm:$0xff]   ;;  %v4670_v0 = vld [vmem:[%s6333_s1 + $0xae8] ss:$16 sps:$4 sm:$0xff]   ;;  %v4675_v1 = vld [vmem:[%s6333_s1 + $0xb04] ss:$16 sps:$4 sm:$0xff]  }
 0x132   :  { %v4678_v2 = vld [vmem:[%s6333_s1 + $0xb0c] ss:$16 sps:$4 sm:$0xff]   ;;  %v4673_v3 = vld [vmem:[%s6333_s1 + $0xb00] ss:$16 sps:$4 sm:$0xff]   ;;  %v4676_v4 = vld [vmem:[%s6333_s1 + $0xb08] ss:$16 sps:$4 sm:$0xff]  }
 0x133   :  { %2608 = vmatpush1.bf16.msra.mxu0 %v4601_v16  ;;  %2854 = vmatpush1.bf16.msra.mxu1 %v4604_v17  ;;  %v4681_v5 = vld [vmem:[%s6333_s1 + $0xb24] ss:$16 sps:$4 sm:$0xff]   ;;  %v4684_v6 = vld [vmem:[%s6333_s1 + $0xb2c] ss:$16 sps:$4 sm:$0xff]   ;;  %v4679_v7 = vld [vmem:[%s6333_s1 + $0xb20] ss:$16 sps:$4 sm:$0xff]  }
 0x134   :  { %2609 = vmatprep.subr.bf16.mxu0 %v4609_v18  ;;  %2855 = vmatprep.subr.bf16.mxu1 %v4612_v20  ;;  %v4682_v8 = vld [vmem:[%s6333_s1 + $0xb28] ss:$16 sps:$4 sm:$0xff]   ;;  %v4687_v9 = vld [vmem:[%s6333_s1 + $0xb44] ss:$16 sps:$4 sm:$0xff]   ;;  %v4690_v10 = vld [vmem:[%s6333_s1 + $0xb4c] ss:$16 sps:$4 sm:$0xff]  }
 0x135   :  { %v4685_v11 = vld [vmem:[%s6333_s1 + $0xb40] ss:$16 sps:$4 sm:$0xff]   ;;  %v4688_v13 = vld [vmem:[%s6333_s1 + $0xb48] ss:$16 sps:$4 sm:$0xff]   ;;  %v4693_v14 = vld [vmem:[%s6333_s1 + $0xb64] ss:$16 sps:$4 sm:$0xff]  }
 0x136   :  { %v4696_v15 = vld [vmem:[%s6333_s1 + $0xb6c] ss:$16 sps:$4 sm:$0xff]   ;;  %v4691_v16 = vld [vmem:[%s6333_s1 + $0xb60] ss:$16 sps:$4 sm:$0xff]   ;;  %v4694_v17 = vld [vmem:[%s6333_s1 + $0xb68] ss:$16 sps:$4 sm:$0xff]  }
 0x137   :  { %2610 = vmatpush1.bf16.msra.mxu0 %v4607_v21  ;;  %2856 = vmatpush1.bf16.msra.mxu1 %v4610_v23  ;;  %v4699_v18 = vld [vmem:[%s6333_s1 + $0xb84] ss:$16 sps:$4 sm:$0xff]   ;;  %v4702_v20 = vld [vmem:[%s6333_s1 + $0xb8c] ss:$16 sps:$4 sm:$0xff]   ;;  %v4697_v21 = vld [vmem:[%s6333_s1 + $0xb80] ss:$16 sps:$4 sm:$0xff]  }
 0x138   :  { %2611 = vmatprep.subr.bf16.mxu0 %v4615_v19  ;;  %2857 = vmatprep.subr.bf16.mxu1 %v4618_v25  ;;  %v4700_v23 = vld [vmem:[%s6333_s1 + $0xb88] ss:$16 sps:$4 sm:$0xff]   ;;  %v4705_v19 = vld [vmem:[%s6333_s1 + $0xba4] ss:$16 sps:$4 sm:$0xff]   ;;  %v4708_v25 = vld [vmem:[%s6333_s1 + $0xbac] ss:$16 sps:$4 sm:$0xff]  }
 0x139   :  { %v4709_v31 = vld [vmem:[%s6333_s1 + $0xbc0] ss:$16 sps:$4 sm:$0xff]   ;;  %vm4833_vm0 = vmmov 0   ;;  %vm3467_vm1 = vcmask 261120   ;;  %vm3580_vm2 = vcmask 254976  }
 0x13b   :  { %2612 = vmatpush1.bf16.msra.mxu0 %v4613_v12  ;;  %2858 = vmatpush1.bf16.msra.mxu1 %v4616_v27  ;;  %v4703_v12 = vld [vmem:[%s6333_s1 + $0xba0] ss:$16 sps:$4 sm:$0xff]   ;;  %v4706_v27 = vld [vmem:[%s6333_s1 + $0xba8] ss:$16 sps:$4 sm:$0xff]  }
 0x13c   :  { %2613 = vmatprep.subr.bf16.mxu0 %v4621_v28  ;;  %2859 = vmatprep.subr.bf16.mxu1 %v4624_v30  ;;  %v4711_v28 = vld [vmem:[%s6333_s1 + $0xbc4] ss:$16 sps:$4 sm:$0xff]   ;;  %v4714_v30 = vld [vmem:[%s6333_s1 + $0xbcc] ss:$16 sps:$4 sm:$0xff]  }
 0x13f   :  { %2614 = vmatpush1.bf16.msra.mxu0 %v4619_v22  ;;  %2860 = vmatpush1.bf16.msra.mxu1 %v4622_v32  ;;  %v4712_v22 = vld [vmem:[%s6333_s1 + $0xbc8] ss:$16 sps:$4 sm:$0xff]   ;;  %v4717_v32 = vld [vmem:[%s6333_s1 + $0xbe4] ss:$16 sps:$4 sm:$0xff]  }
 0x140   :  { %2624 = vmatprep.subr.bf16.mxu0 %v4627_v33  ;;  %2870 = vmatprep.subr.bf16.mxu1 %v4630_v26  ;;  %v4720_v33 = vld [vmem:[%s6333_s1 + $0xbec] ss:$16 sps:$4 sm:$0xff]   ;;  %v4715_v26 = vld [vmem:[%s6333_s1 + $0xbe0] ss:$16 sps:$4 sm:$0xff]  }
 0x142   :  { %2616 = vmatmul.mubr.bf16.vlgmr.msra.gmra.mrb[0].mxu0 %v5722_v29  ;;  %2862 = vmatmul.mubr.bf16.vlgmr.msra.gmra.mrb[0].mxu1 %v5722_v29  ;;  %v4642_v29 = vld [vmem:[%s6333_s1 + $0xa4c] ss:$16 sps:$4 sm:$0xff]  }
 0x143   :  { %2625 = vmatpush1.bf16.msra.mxu0 %v4625_v35  ;;  %2871 = vmatpush1.bf16.msra.mxu1 %v4628_v36  ;;  %v4718_v35 = vld [vmem:[%s6333_s1 + $0xbe8] ss:$16 sps:$4 sm:$0xff]   ;;  %v4724_v36 = vld [vmem:[%s6335_s3 + $0x4] ss:$8 sps:$4 sm:$0xff]  }
 0x144   :  { %2626 = vmatprep.subr.bf16.mxu0 %v4633_v37  ;;  %2872 = vmatprep.subr.bf16.mxu1 %v4636_v49  ;;  %v4722_v37 = vld [vmem:[%s6335_s3] ss:$8 sps:$4 sm:$0xff]   ;;  %v4727_v49 = vld [vmem:[%s6335_s3 + $0x14] ss:$8 sps:$4 sm:$0xff]  }
 0x145   :  { %2656 = vmatprep.mubr.bf16.mxu0 %v486_v24  ;;  %2902 = vmatprep.mubr.bf16.mxu1 %v486_v24  ;;  %v4725_v24 = vld [vmem:[%s6335_s3 + $0x10] ss:$8 sps:$4 sm:$0xff]  }
 0x147   :  { %2627 = vmatpush1.bf16.msra.mxu0 %v4631_v38  ;;  %2873 = vmatpush1.bf16.msra.mxu1 %v4634_v39  ;;  %v4730_v38 = vld [vmem:[%s6335_s3 + $0x24] ss:$8 sps:$4 sm:$0xff]   ;;  %v4728_v39 = vld [vmem:[%s6335_s3 + $0x20] ss:$8 sps:$4 sm:$0xff]  }
 0x148   :  { %2628 = vmatprep.subr.bf16.mxu0 %v4639_v40  ;;  %2874 = vmatprep.subr.bf16.mxu1 %v4642_v29  ;;  %v4731_v40 = vld [vmem:[%s6335_s3 + $0x30] ss:$8 sps:$4 sm:$0xff]   ;;  %v4736_v29 = vld [vmem:[%s6335_s3 + $0x44] ss:$8 sps:$4 sm:$0xff]  }
 0x14b   :  { %2629 = vmatpush1.bf16.msra.mxu0 %v4637_v41  ;;  %2875 = vmatpush1.bf16.msra.mxu1 %v4640_v42  ;;  %v4734_v41 = vld [vmem:[%s6335_s3 + $0x40] ss:$8 sps:$4 sm:$0xff]   ;;  %v4739_v42 = vld [vmem:[%s6335_s3 + $0x54] ss:$8 sps:$4 sm:$0xff]  }
 0x14c   :  { %2630 = vmatprep.subr.bf16.mxu0 %v4645_v44  ;;  %2876 = vmatprep.subr.bf16.mxu1 %v4648_v45  ;;  %v4737_v44 = vld [vmem:[%s6335_s3 + $0x50] ss:$8 sps:$4 sm:$0xff]   ;;  %v4742_v45 = vld [vmem:[%s6335_s3 + $0x64] ss:$8 sps:$4 sm:$0xff]  }
 0x14f   :  { %2631 = vmatpush1.bf16.msra.mxu0 %v4643_v46  ;;  %2877 = vmatpush1.bf16.msra.mxu1 %v4646_v47  ;;  %v4740_v46 = vld [vmem:[%s6335_s3 + $0x60] ss:$8 sps:$4 sm:$0xff]   ;;  %v4745_v47 = vld [vmem:[%s6335_s3 + $0x74] ss:$8 sps:$4 sm:$0xff]  }
 0x150   :  { %2632 = vmatprep.subr.bf16.mxu0 %v4651_v48  ;;  %2878 = vmatprep.subr.bf16.mxu1 %v4654_v50  ;;  %v4743_v48 = vld [vmem:[%s6335_s3 + $0x70] ss:$8 sps:$4 sm:$0xff]   ;;  %v4748_v50 = vld [vmem:[%s6335_s3 + $0x84] ss:$8 sps:$4 sm:$0xff]  }
 0x153   :  { %2633 = vmatpush1.bf16.msra.mxu0 %v4649_v51  ;;  %2879 = vmatpush1.bf16.msra.mxu1 %v4652_v52  ;;  %v4746_v51 = vld [vmem:[%s6335_s3 + $0x80] ss:$8 sps:$4 sm:$0xff]   ;;  %v4751_v52 = vld [vmem:[%s6335_s3 + $0x94] ss:$8 sps:$4 sm:$0xff]  }
 0x154   :  { %2634 = vmatprep.subr.bf16.mxu0 %v4657_v53  ;;  %2880 = vmatprep.subr.bf16.mxu1 %v4660_v54  ;;  %v4749_v53 = vld [vmem:[%s6335_s3 + $0x90] ss:$8 sps:$4 sm:$0xff]   ;;  %v4754_v54 = vld [vmem:[%s6335_s3 + $0xa4] ss:$8 sps:$4 sm:$0xff]  }
 0x157   :  { %2635 = vmatpush1.bf16.msra.mxu0 %v4655_v55  ;;  %2881 = vmatpush1.bf16.msra.mxu1 %v4658_v56  ;;  %v4752_v55 = vld [vmem:[%s6335_s3 + $0xa0] ss:$8 sps:$4 sm:$0xff]   ;;  %v4757_v56 = vld [vmem:[%s6335_s3 + $0xb4] ss:$8 sps:$4 sm:$0xff]  }
 0x158   :  { %2636 = vmatprep.subr.bf16.mxu0 %v4663_v57  ;;  %2882 = vmatprep.subr.bf16.mxu1 %v4666_v58  ;;  %v4755_v57 = vld [vmem:[%s6335_s3 + $0xb0] ss:$8 sps:$4 sm:$0xff]   ;;  %v4760_v58 = vld [vmem:[%s6335_s3 + $0xc4] ss:$8 sps:$4 sm:$0xff]  }
 0x15b   :  { %2637 = vmatpush1.bf16.msra.mxu0 %v4661_v59  ;;  %2883 = vmatpush1.bf16.msra.mxu1 %v4664_v60  ;;  %v4758_v59 = vld [vmem:[%s6335_s3 + $0xc0] ss:$8 sps:$4 sm:$0xff]   ;;  %v4763_v60 = vld [vmem:[%s6335_s3 + $0xd4] ss:$8 sps:$4 sm:$0xff]  }
 0x15c   :  { %2638 = vmatprep.subr.bf16.mxu0 %v4669_v61  ;;  %2884 = vmatprep.subr.bf16.mxu1 %v4672_v62  ;;  %v4761_v61 = vld [vmem:[%s6335_s3 + $0xd0] ss:$8 sps:$4 sm:$0xff]   ;;  %v4766_v62 = vld [vmem:[%s6335_s3 + $0xe4] ss:$8 sps:$4 sm:$0xff]  }
 0x15f   :  { %2639 = vmatpush1.bf16.msra.mxu0 %v4667_v63  ;;  %2885 = vmatpush1.bf16.msra.mxu1 %v4670_v0  ;;  %v4764_v63 = vld [vmem:[%s6335_s3 + $0xe0] ss:$8 sps:$4 sm:$0xff]   ;;  %v4769_v0 = vld [vmem:[%s6335_s3 + $0xf4] ss:$8 sps:$4 sm:$0xff]  }
 0x160   :  { %2640 = vmatprep.subr.bf16.mxu0 %v4675_v1  ;;  %2886 = vmatprep.subr.bf16.mxu1 %v4678_v2  ;;  %v4767_v1 = vld [vmem:[%s6335_s3 + $0xf0] ss:$8 sps:$4 sm:$0xff]   ;;  %v4770_v2 = vld [vmem:[%s6337_s5] ss:$8 sps:$4 sm:$0xff]  }
 0x163   :  { %2641 = vmatpush1.bf16.msra.mxu0 %v4673_v3  ;;  %2887 = vmatpush1.bf16.msra.mxu1 %v4676_v4  ;;  %v4772_v3 = vld [vmem:[%s6337_s5 + $0x4] ss:$8 sps:$4 sm:$0xff]   ;;  %v4775_v4 = vld [vmem:[%s6337_s5 + $0x14] ss:$8 sps:$4 sm:$0xff]  }
 0x164   :  { %2642 = vmatprep.subr.bf16.mxu0 %v4681_v5  ;;  %2888 = vmatprep.subr.bf16.mxu1 %v4684_v6  ;;  %v4773_v5 = vld [vmem:[%s6337_s5 + $0x10] ss:$8 sps:$4 sm:$0xff]   ;;  %v4778_v6 = vld [vmem:[%s6337_s5 + $0x24] ss:$8 sps:$4 sm:$0xff]  }
 0x167   :  { %2643 = vmatpush1.bf16.msra.mxu0 %v4679_v7  ;;  %2889 = vmatpush1.bf16.msra.mxu1 %v4682_v8  ;;  %v4776_v7 = vld [vmem:[%s6337_s5 + $0x20] ss:$8 sps:$4 sm:$0xff]   ;;  %v4781_v8 = vld [vmem:[%s6337_s5 + $0x34] ss:$8 sps:$4 sm:$0xff]  }
 0x168   :  { %2644 = vmatprep.subr.bf16.mxu0 %v4687_v9  ;;  %2890 = vmatprep.subr.bf16.mxu1 %v4690_v10  ;;  %v4779_v9 = vld [vmem:[%s6337_s5 + $0x30] ss:$8 sps:$4 sm:$0xff]   ;;  %v4784_v10 = vld [vmem:[%s6337_s5 + $0x44] ss:$8 sps:$4 sm:$0xff]  }
 0x16b   :  { %2645 = vmatpush1.bf16.msra.mxu0 %v4685_v11  ;;  %2891 = vmatpush1.bf16.msra.mxu1 %v4688_v13  ;;  %v4782_v11 = vld [vmem:[%s6337_s5 + $0x40] ss:$8 sps:$4 sm:$0xff]   ;;  %v4787_v13 = vld [vmem:[%s6337_s5 + $0x54] ss:$8 sps:$4 sm:$0xff]  }
 0x16c   :  { %2646 = vmatprep.subr.bf16.mxu0 %v4693_v14  ;;  %2892 = vmatprep.subr.bf16.mxu1 %v4696_v15  ;;  %v4785_v14 = vld [vmem:[%s6337_s5 + $0x50] ss:$8 sps:$4 sm:$0xff]   ;;  %v2925_v15 = vsub.s32 0, %v5022_v43 }
 0x16f   :  { %2647 = vmatpush1.bf16.msra.mxu0 %v4691_v16  ;;  %2893 = vmatpush1.bf16.msra.mxu1 %v4694_v17 }
 0x170   :  { %2648 = vmatprep.subr.bf16.mxu0 %v4699_v18  ;;  %2894 = vmatprep.subr.bf16.mxu1 %v4702_v20  ;;  %v2921_v18 = vld [vmem:[%s6334_s2] sm:$0x3]  ;;  %v2929_v20 = vsub.s32 1, %v5022_v43 }
 0x173   :  { %2649 = vmatpush1.bf16.msra.mxu0 %v4697_v21  ;;  %2895 = vmatpush1.bf16.msra.mxu1 %v4700_v23 }
 0x174   :  { %2650 = vmatprep.subr.bf16.mxu0 %v4705_v19  ;;  %2896 = vmatprep.subr.bf16.mxu1 %v4708_v25 }
 0x177   :  { %2651 = vmatpush1.bf16.msra.mxu0 %v4703_v12  ;;  %2897 = vmatpush1.bf16.msra.mxu1 %v4706_v27 }
 0x178   :  { %2652 = vmatprep.subr.bf16.mxu0 %v4711_v28  ;;  %2898 = vmatprep.subr.bf16.mxu1 %v4714_v30  ;;  %v2926_v30 = vrot.slane %v2921_v18, %v2925_v15 }
 0x17b   :  { %2653 = vmatpush1.bf16.msra.mxu0 %v4709_v31  ;;  %2899 = vmatpush1.bf16.msra.mxu1 %v4712_v22 }
 0x17c   :  { %2654 = vmatprep.subr.bf16.mxu0 %v4717_v32  ;;  %2900 = vmatprep.subr.bf16.mxu1 %v4720_v33  ;;  %v2930_v33 = vrot.slane %v2921_v18, %v2929_v20  ;;  %v4805_v20 = vld [vmem:[%s6343_s11 + $0x8] sm:$0xff]  }
 0x17f   :  { %2655 = vmatpush1.bf16.msra.mxu0 %v4715_v26  ;;  %2901 = vmatpush1.bf16.msra.mxu1 %v4718_v35 }
 0x180   :  { %3131 = vmatprep.subr.bf16.mxu0 %v4724_v36  ;;  %3279 = vmatprep.subr.bf16.mxu1 %v4772_v3 }
 0x182   :  { %2657 = vmatmul.mubr.bf16.vlgmr.msra.gmra.mrb[0].mxu0 %v5923_v34  ;;  %2903 = vmatmul.mubr.bf16.vlgmr.msra.gmra.mrb[0].mxu1 %v5923_v34  ;;  %v4733_v34 = vld [vmem:[%s6335_s3 + $0x34] ss:$8 sps:$4 sm:$0xff]  }
 0x183   :  { %3132 = vmatpush1.bf16.msra.mxu0 %v4722_v37  ;;  %3280 = vmatpush1.bf16.msra.mxu1 %v4770_v2 }
 0x184   :  { %3133 = vmatprep.subr.bf16.mxu0 %v4727_v49  ;;  %3281 = vmatprep.subr.bf16.mxu1 %v4775_v4 }
 0x187   :  { %3134 = vmatpush1.bf16.msra.mxu0 %v4725_v24  ;;  %3282 = vmatpush1.bf16.msra.mxu1 %v4773_v5 }
 0x188   :  { %3135 = vmatprep.subr.bf16.mxu0 %v4730_v38  ;;  %3283 = vmatprep.subr.bf16.mxu1 %v4778_v6 }
 0x18b   :  { %3136 = vmatpush1.bf16.msra.mxu0 %v4728_v39  ;;  %3284 = vmatpush1.bf16.msra.mxu1 %v4776_v7  ;;  %v4790_v39 = vld [vmem:[%s6337_s5 + $0x64] ss:$8 sps:$4 sm:$0xff]  }
 0x18c   :  { %3137 = vmatprep.subr.bf16.mxu0 %v4733_v34  ;;  %3285 = vmatprep.subr.bf16.mxu1 %v4781_v8  ;;  %v4788_v34 = vld [vmem:[%s6337_s5 + $0x60] ss:$8 sps:$4 sm:$0xff]  }
 0x18d   :  { %v4803_v8 = vld [vmem:[%s6341_s9 + $0x8] sm:$0xff]  }
 0x18f   :  { %3138 = vmatpush1.bf16.msra.mxu0 %v4731_v40  ;;  %3286 = vmatpush1.bf16.msra.mxu1 %v4779_v9  ;;  %v4793_v40 = vld [vmem:[%s6337_s5 + $0x74] ss:$8 sps:$4 sm:$0xff]   ;;  %v4804_v9 = vld [vmem:[%s6343_s11] sm:$0xff]  }
 0x190   :  { %3139 = vmatprep.subr.bf16.mxu0 %v4736_v29  ;;  %3287 = vmatprep.subr.bf16.mxu1 %v4784_v10  ;;  %v4791_v29 = vld [vmem:[%s6337_s5 + $0x70] ss:$8 sps:$4 sm:$0xff]   ;;  %v4030_v10 = vld [vmem:[%s6340_s8] ss:$0 sm:$0xff] }
 0x193   :  { %3140 = vmatpush1.bf16.msra.mxu0 %v4734_v41  ;;  %3288 = vmatpush1.bf16.msra.mxu1 %v4782_v11  ;;  %v4831_v41 = vmov 0  }
 0x194   :  { %3141 = vmatprep.subr.bf16.mxu0 %v4739_v42  ;;  %3289 = vmatprep.subr.bf16.mxu1 %v4787_v13  ;;  %v4832_v42 = vmov 0.0  }
 0x195   :  { %3311 = vmatprep.mubr.bf16.mxu1 %v4831_v41 }
 0x197   :  { %3142 = vmatpush1.bf16.msra.mxu0 %v4737_v44  ;;  %3290 = vmatpush1.bf16.msra.mxu1 %v4785_v14 }
 0x198   :  { %3143 = vmatprep.subr.bf16.mxu0 %v4742_v45  ;;  %3291 = vmatprep.subr.bf16.mxu1 %v4790_v39 }
 0x19b   :  { %3144 = vmatpush1.bf16.msra.mxu0 %v4740_v46  ;;  %3292 = vmatpush1.bf16.msra.mxu1 %v4788_v34  ;;  %v4012_v46 = vld [vmem:[%s6336_s4] ss:$0 sm:$0xff]  ;;  %s4834_s4 = smov [#allocation2]  }
 0x19c   :  { %3145 = vmatprep.subr.bf16.mxu0 %v4745_v47  ;;  %3293 = vmatprep.subr.bf16.mxu1 %v4793_v40  ;;  %s3588_s11 = sshll.u32 %s4834_s4, 4  ;;  %s3589_s11 = int_to_ptr.vmem [resolvable:$true] %s3588_s11 }
 0x19d   :  { %p4811_p1 = scmp.lt.s32.totalorder %s3589_s11, %s3589_s11 }
 0x19f   :  { %3146 = vmatpush1.bf16.msra.mxu0 %v4743_v48  ;;  %3294 = vmatpush1.bf16.msra.mxu1 %v4791_v29 }
 0x1a0   :  { %3147 = vmatprep.subr.bf16.mxu0 %v4748_v50  ;;  %4062 = vmatprep.subr.bf16.mxu1 %v4832_v42 }
 0x1a3   :  { %3148 = vmatpush1.bf16.msra.mxu0 %v4746_v51 }
 0x1a4   :  { %3149 = vmatprep.subr.bf16.mxu0 %v4751_v52 }
 0x1a7   :  { %3150 = vmatpush1.bf16.msra.mxu0 %v4749_v53  ;;  %v4794_v53 = vld [vmem:[%s6339_s7] sm:$0xff]  }
 0x1a8   :  { %3151 = vmatprep.subr.bf16.mxu0 %v4754_v54 }
 0x1ab   :  { %3152 = vmatpush1.bf16.msra.mxu0 %v4752_v55  ;;  %v4795_v55 = vld [vmem:[%s6339_s7 + $0x8] sm:$0xff]  }
 0x1ac   :  { %3153 = vmatprep.subr.bf16.mxu0 %v4757_v56  ;;  %v4796_v56 = vld [vmem:[%s6339_s7 + $0x10] sm:$0xff]  }
 0x1af   :  { %3154 = vmatpush1.bf16.msra.mxu0 %v4755_v57  ;;  %v4797_v57 = vld [vmem:[%s6339_s7 + $0x18] sm:$0xff]  }
 0x1b0   :  { %3155 = vmatprep.subr.bf16.mxu0 %v4760_v58  ;;  %v4798_v58 = vld [vmem:[%s6339_s7 + $0x20] sm:$0xff]  }
 0x1b3   :  { %3156 = vmatpush1.bf16.msra.mxu0 %v4758_v59  ;;  %v4799_v59 = vld [vmem:[%s6339_s7 + $0x28] sm:$0xff]  }
 0x1b4   :  { %3157 = vmatprep.subr.bf16.mxu0 %v4763_v60  ;;  %v4800_v60 = vld [vmem:[%s6339_s7 + $0x30] sm:$0xff]  }
 0x1b7   :  { %3158 = vmatpush1.bf16.msra.mxu0 %v4761_v61  ;;  %v4801_v61 = vld [vmem:[%s6339_s7 + $0x38] sm:$0xff]  }
 0x1b8   :  { %3159 = vmatprep.subr.bf16.mxu0 %v4766_v62  ;;  %v4802_v62 = vld [vmem:[%s6341_s9] sm:$0xff]  }
 0x1bb   :  { %3160 = vmatpush1.bf16.msra.mxu0 %v4764_v63 }
 0x1bc   :  { %3161 = vmatprep.subr.bf16.mxu0 %v4769_v0 }
 0x1bf   :  { %3162 = vmatpush1.bf16.msra.mxu0 %v4767_v1  ;;  %v4029_v1 = vld [vmem:[%s6338_s6] ss:$0 sm:$0xff] }
 0x1c0   :  { %4082 = vmatprep.subr.bf16.mxu0 %v4832_v42 }
 0x255   :  { %v2658_v16 = vpop.f32.mrb[0].mxu0  ;;  %v2904_v17 = vpop.f32.mrb[0].mxu1 }
 0x256   :  { %v2911_v21 = vmax.f32 %v2658_v16, %v2904_v17  ;;  %v2660_v23 = vpop.f32.mrb[1].mxu0  ;;  %v2906_v19 = vpop.f32.mrb[1].mxu1 }
 0x257   :  { %v2912_v25 = vmax.f32 %v2660_v23, %v2906_v19  ;;  %v2662_v12 = vpop.f32.mrb[2].mxu0  ;;  %v2908_v27 = vpop.f32.mrb[2].mxu1 }
 0x258   :  { %v2915_v28 = vrot.slane %v2911_v21, 2  ;;  %v2663_v31 = vpop.f32.mrb[3].mxu0  ;;  %v2909_v22 = vpop.f32.mrb[3].mxu1 }
 0x259   :  { %v2916_v32 = vrot.slane %v2912_v25, 2  ;;  %v4043_v31 = vld [vmem:[%s6344_s12] ss:$0 sm:$0xff] }
 0x25a   :  { %v2919_v26 = vmax.f32 %v2911_v21, %v2915_v28  ;;  %v4039_v21 = vld [vmem:[%s6342_s10] ss:$0 sm:$0xff]  ;;  %s4806_s10 = scalar_lea.vmem %s3589_s11, 32 }
 0x25b   :  { %v2920_v35 = vmax.f32 %v2912_v25, %v2916_v32  ;;  %p4807_p0 = scmp.ne.s32.totalorder %s3589_s11, %s4806_s10  ;;  %p4812_p2 = scmp.lt.s32.totalorder %s4806_s10, %s4806_s10 }
 0x25c   :  { %v2933_v36 = vadd.f32 %v2926_v30, %v2919_v26 }
 0x25d   :  { %v2934_v37 = vadd.f32 %v2930_v33, %v2920_v35  ;;  %p4813_p3 = por %p4812_p2, %p4811_p1 }
 0x25e   :  { %v2935_v49 = vmax.f32 %v2933_v36, 0.0 }
 0x25f   :  { %v2936_v24 = vmax.f32 %v2934_v37, 0.0  ;;  %p4814_p4 = pnand %p4813_p3, %p4807_p0 }
 0x260   :  { %v2937_v43 = vpack.c.bf16 %v2935_v49, %v2935_v49 }
 0x261   :  { %v2938_v38 = vpack.c.bf16 %v2936_v24, %v2936_v24 }
 0x263   :  { %3163 = vmatprep.mubr.bf16.mxu0 %v2938_v38 }
 0x264   :  { %3164 = vmatmul.mubr.bf16.vlgmr.msra.gmra.mrb[4].mxu0 %v2937_v43 }
 0x265   :  { %4086 = vmatprep.mubr.msk.bf16.mxu0 %vm4833_vm0, %v4832_v42  ;;  %4083 = vmatpush3.bf16.msra.mxu0 %v4802_v62 }
 0x266   :  { %4084 = vmatprep.subr.bf16.mxu0 %v4832_v42 }
 0x269   :  { %4085 = vmatpush3.bf16.msra.mxu0 %v4803_v8 }
 0x337   :  { %v3165_v44 = vpop.f32.mrb[4].mxu0 }
 0x338   :  { %v3167_v45 = vpop.f32.mrb[5].mxu0 }
 0x339   :  { %v3172_v47 = vmax.f32 %v3165_v44, %v3167_v45  ;;  %v3169_v48 = vpop.f32.mrb[6].mxu0 }
 0x33a   :  { %v3170_v50 = vpop.f32.mrb[7].mxu0 }
 0x33b   :  { %v3180_v51 = vadd.f32 %v4012_v46, %v3172_v47 }
 0x33d   :  { %v3181_v52 = vmax.f32 %v3180_v51, 0.0 }
 0x33f   :  { %v3182_v54 = vpack.c.bf16 %v3181_v52, %v3181_v52 }
 0x341   :  { %3312 = vmatmul.mubr.bf16.vlgmr.msra.gmra.mrb[4].mxu1 %v3182_v54 }
 0x342   :  { %4063 = vmatpush3.bf16.msra.mxu1 %v4794_v53  ;;  %4078 = vmatprep.mubr.msk.bf16.mxu1 %vm4833_vm0, %v4832_v42 }
 0x343   :  { %4064 = vmatprep.subr.bf16.mxu1 %v4832_v42 }
 0x346   :  { %4065 = vmatpush3.bf16.msra.mxu1 %v4795_v55 }
 0x347   :  { %4066 = vmatprep.subr.bf16.mxu1 %v4832_v42 }
 0x34a   :  { %4067 = vmatpush3.bf16.msra.mxu1 %v4796_v56 }
 0x34b   :  { %4068 = vmatprep.subr.bf16.mxu1 %v4832_v42 }
 0x34e   :  { %4069 = vmatpush3.bf16.msra.mxu1 %v4797_v57 }
 0x34f   :  { %4070 = vmatprep.subr.bf16.mxu1 %v4832_v42 }
 0x352   :  { %4071 = vmatpush3.bf16.msra.mxu1 %v4798_v58 }
 0x353   :  { %4072 = vmatprep.subr.bf16.mxu1 %v4832_v42 }
 0x356   :  { %4073 = vmatpush3.bf16.msra.mxu1 %v4799_v59 }
 0x357   :  { %4074 = vmatprep.subr.bf16.mxu1 %v4832_v42 }
 0x35a   :  { %4075 = vmatpush3.bf16.msra.mxu1 %v4800_v60 }
 0x35b   :  { %4076 = vmatprep.subr.bf16.mxu1 %v4832_v42 }
 0x35e   :  { %4077 = vmatpush3.bf16.msra.mxu1 %v4801_v61 }
 0x35f   :  { %4090 = vmatprep.subr.bf16.mxu1 %v4832_v42 }
 0x414   :  { %v3313_v63 = vpop.f32.mrb[4].mxu1 }
 0x415   :  { %v3315_v0 = vpop.f32.mrb[5].mxu1 }
 0x416   :  { %v3320_v2 = vmax.f32 %v3313_v63, %v3315_v0  ;;  %v3317_v3 = vpop.f32.mrb[6].mxu1 }
 0x417   :  { %v3318_v4 = vpop.f32.mrb[7].mxu1 }
 0x418   :  { %v3328_v5 = vadd.f32 %v4029_v1, %v3320_v2 }
 0x41a   :  { %v3329_v6 = vmax.f32 %v3328_v5, 0.0 }
 0x41c   :  { %v3330_v7 = vpack.c.bf16 %v3329_v6, %v3329_v6 }
 0x41e   :  { %4079 = vmatmul.mubr.bf16.vlgmr.msra.gmra.mrb[8].mxu1 %v3330_v7 }
 0x41f   :  { %4094 = vmatprep.mubr.msk.bf16.mxu1 %vm4833_vm0, %v4832_v42  ;;  %4091 = vmatpush3.bf16.msra.mxu1 %v4804_v9 }
 0x420   :  { %4092 = vmatprep.subr.bf16.mxu1 %v4832_v42 }
 0x423   :  { %4093 = vmatpush3.bf16.msra.mxu1 %v4805_v20 }
 0x4f1   :  { %v3436_v11 = vpop.f32.mrb[8].mxu1 }
 0x4f2   :  { %v3437_v13 = vadd.f32 %v4030_v10, %v3436_v11  ;;  %v4080_v14 = vpop.f32.mrb[9].mxu1 }
 0x4f3   :  { %v3439_v15 = vpop.f32.mrb[10].mxu1 }
 0x4f4   :  { %v3442_v16 = vmax.f32 %v3437_v13, 0.0  ;;  %v4081_v17 = vpop.f32.mrb[11].mxu1 }
 0x4f6   :  { %v3443_v18 = vpack.c.bf16 %v3442_v16, %v3442_v16 }
 0x4f8   :  { %4087 = vmatmul.mubr.msk.bf16.vlgmr.msra.gmra.mrb[8].mxu0 %vm3467_vm1, %v3443_v18 }
 0x5cb   :  { %v3505_v23 = vpop.f32.mrb[8].mxu0 }
 0x5cc   :  { %v3506_v19 = vadd.f32 %v4039_v21, %v3505_v23  ;;  %v4088_v25 = vpop.f32.mrb[9].mxu0 }
 0x5cd   :  { %v3508_v12 = vpop.f32.mrb[10].mxu0 }
 0x5ce   :  { %v3511_v27 = vmax.f32 %v3506_v19, 0.0  ;;  %v4089_v28 = vpop.f32.mrb[11].mxu0 }
 0x5d0   :  { %v3512_v30 = vpack.c.bf16 %v3511_v27, %v3511_v27 }
 0x5d2   :  { %4095 = vmatmul.mubr.msk.bf16.vlgmr.msra.gmra.mrb[12].mxu1 %vm3467_vm1, %v3512_v30 }
 0x6a5   :  { %v3573_v22 = vpop.f32.mrb[12].mxu1 }
 0x6a6   :  { %v3574_v32 = vadd.f32 %v4043_v31, %v3573_v22  ;;  %v4096_v33 = vpop.f32.mrb[13].mxu1 }
 0x6a7   :  { %v3576_v26 = vpop.f32.mrb[14].mxu1 }
 0x6a8   :  { %v3579_v35 = vmax.f32 %v3574_v32, 0.0  ;;  %v4097_v36 = vpop.f32.mrb[15].mxu1 }
 0x6aa   :  { %3581 = vst.msk [vmem:[#allocation2] sm:$0x3] %vm3580_vm2, %v3579_v35 }
 0x6ab   :  { %4817 = shalt.err (!%p4814_p4)
}
 0x6ac   :  { %s4818_s25 = scalar_lea.hbm %s6345_s13, 32 }
 0x6ad   :  { %p4819_p5 = scmp.ne.s32.totalorder %s6345_s13, %s4818_s25  ;;  %p4822_p6 = scmp.lt.u32.totalorder %s4818_s25, %s6345_s13 }
 0x6af   :  { %p4824_p7 = pnand %p4822_p6, %p4819_p5 }
 0x6b1   :  { %4827 = shalt.err (!%p4824_p7)
}
 0x6b2   :  { %3591 = dma.vmem_to_hbm [thread:$0]  %s3589_s11, 32, %s6345_s13, [#allocation3]  }
 0x6b3   :  { %4828 = dma.done.wait [#allocation3], 32  }
 0x6b4   :  { %4829 = vsyncadd [#allocation3], 4294967264 }
 0x6b5   :  { %3595 = vsyncpa [#allocation3], 1 }

</bundles_post_ra>
